<compile_context>
chip_gen: v5e
topology: v5e:2x2
jax: 0.10.0
libtpu: 0.0.40
codegen_flags: <defaults>
</compile_context>

<pallas_src>
import math

import jax
import jax.numpy as jnp
from jax.experimental import pallas as pl
from jax.experimental.pallas import tpu as pltpu

_LOG_2PI = math.log(2.0 * math.pi)
_OUT_LANES = 8  # narrow full-dim output slab: col 0 = reconst, col 1 = kl


def gaussian_vae_kernel(
    x_ref, eps_ref,
    w1_ref, b1_ref,            # encoder FC (eval-BN folded)
    wm_ref, bm_ref,            # mean_encoder
    wv_ref, bv_ref,            # var_encoder
    wd1_ref, bd1_ref,          # decoder FC (eval-BN folded)
    wdm_ref, bdm_ref,          # mean_decoder
    wdv_ref, bdv_ref,          # var_decoder
    out_ref,
):
    x = x_ref[...]                       # (TB, n_input)  f32
    eps = eps_ref[...]                   # (TB, n_latent) f32
    cdt = w1_ref.dtype                   # MXU compute dtype (bf16 by default)
    n_input = x.shape[1]

    # ---- Encoder FCLayers: Linear (+folded eval-BN) -> ReLU -> Dropout(eval = id)
    h = jnp.dot(x.astype(cdt), w1_ref[...], preferred_element_type=jnp.float32)
    h = jnp.maximum(h + b1_ref[...], 0.0)
    hc = h.astype(cdt)

    # ---- Encoder heads: two lane-0-aligned matmuls (no sub-vreg slicing/rotates).
    qz_m = jnp.dot(hc, wm_ref[...], preferred_element_type=jnp.float32) + bm_ref[...]
    lv = jnp.dot(hc, wv_ref[...], preferred_element_type=jnp.float32) + bv_ref[...]
    qz_v = jnp.exp(lv) + 1e-4

    # ---- Reparameterized sample: z ~ N(qz_m, sqrt(qz_v))
    z = qz_m + jnp.sqrt(qz_v) * eps

    # ---- Decoder FCLayers (dropout_rate=0): Linear (+folded eval-BN) -> ReLU
    hd = jnp.dot(z.astype(cdt), wd1_ref[...], preferred_element_type=jnp.float32)
    hd = jnp.maximum(hd + bd1_ref[...], 0.0)
    hdc = hd.astype(cdt)

    # ---- Decoder heads: px_m and log(px_v) (logit reused; no exp/log round-trip).
    px_m = jnp.dot(hdc, wdm_ref[...], preferred_element_type=jnp.float32) + bdm_ref[...]
    px_logv = jnp.dot(hdc, wdv_ref[...], preferred_element_type=jnp.float32) + bdv_ref[...]

    # ---- KL( N(qz_m, sqrt(qz_v)) || N(0, 1) ).sum(axis=1)
    kl = jnp.sum(
        0.5 * (qz_v + qz_m * qz_m - 1.0) - 0.5 * jnp.log(qz_v),
        axis=1, keepdims=True,
    )

    # ---- reconst = -Normal(px_m, sqrt(px_v)).log_prob(x).sum(-1)
    #      = 0.5 * sum[(x - m)^2 * exp(-logv) + logv] + 0.5 * D * log(2*pi)
    d = x - px_m
    nll_sum = jnp.sum(d * d * jnp.exp(-px_logv) + px_logv, axis=-1, keepdims=True)
    reconst = 0.5 * nll_sum + (0.5 * _LOG_2PI) * n_input

    # ---- One narrow store per tile: col 0 = reconst, col 1 = kl, rest 0.
    lane = jax.lax.broadcasted_iota(jnp.int32, out_ref.shape, 1)
    out_ref[...] = jnp.where(lane == 0, reconst, jnp.where(lane == 1, kl, 0.0))


def init_params(key, n_input, n_hidden, n_latent):
    """Deterministic torch-Linear-style init (uniform(-1/sqrt(fan_in), +))."""
    ks = jax.random.split(key, 6)

    def lin(k, fan_in, fan_out):
        bound = 1.0 / math.sqrt(fan_in)
        kw, kb = jax.random.split(k)
        w = jax.random.uniform(kw, (fan_in, fan_out), jnp.float32, -bound, bound)
        b = jax.random.uniform(kb, (1, fan_out), jnp.float32, -bound, bound)
        return w, b

    w1, b1 = lin(ks[0], n_input, n_hidden)      # encoder FC
    wm, bm = lin(ks[1], n_hidden, n_latent)     # mean_encoder
    wv, bv = lin(ks[2], n_hidden, n_latent)     # var_encoder
    wd1, bd1 = lin(ks[3], n_latent, n_hidden)   # decoder FC
    wdm, bdm = lin(ks[4], n_hidden, n_input)    # mean_decoder
    wdv, bdv = lin(ks[5], n_hidden, n_input)    # var_decoder

    # BatchNorm1d(eps=1e-3) at init, eval mode: running_mean=0, running_var=1,
    # gamma=1, beta=0  ->  scale = 1/sqrt(1 + eps), shift = 0.
    bn_eps = 1e-3
    bn_scale = jnp.full((1, n_hidden), 1.0 / math.sqrt(1.0 + bn_eps), jnp.float32)
    bn_shift = jnp.zeros((1, n_hidden), jnp.float32)

    return dict(
        w1=w1, b1=b1, bn1_scale=bn_scale, bn1_shift=bn_shift,
        wm=wm, bm=bm, wv=wv, bv=bv,
        wd1=wd1, bd1=bd1, bnd1_scale=bn_scale, bnd1_shift=bn_shift,
        wdm=wdm, bdm=bdm, wdv=wdv, bdv=bdv,
    )


def _fold_params(params, compute_dtype):
    """Fold eval-mode BN into the Linear layers; cast weights for the MXU."""
    w1 = params["w1"] * params["bn1_scale"]
    b1 = params["b1"] * params["bn1_scale"] + params["bn1_shift"]
    wd1 = params["wd1"] * params["bnd1_scale"]
    bd1 = params["bd1"] * params["bnd1_scale"] + params["bnd1_shift"]
    cd, f32 = compute_dtype, jnp.float32
    return (
        w1.astype(cd), b1.astype(f32),
        params["wm"].astype(cd), params["bm"].astype(f32),
        params["wv"].astype(cd), params["bv"].astype(f32),
        wd1.astype(cd), bd1.astype(f32),
        params["wdm"].astype(cd), params["bdm"].astype(f32),
        params["wdv"].astype(cd), params["bdv"].astype(f32),
    )


def _round_up(a, m):
    return (a + m - 1) // m * m


def _vmem_budget_bytes():
    """~75% of per-core physical VMEM; conservative 64 MiB (v7x) fallback."""
    try:
        cap = int(pltpu.get_tpu_info().vmem_capacity_bytes)
    except Exception:
        cap = 64 * 1024 * 1024
    return (cap * 3) // 4


def gaussian_vae_forward(x, eps, params, *, tile_b=None, compute_dtype=jnp.bfloat16):
    B, n_input = x.shape
    n_latent = eps.shape[1]
    n_hidden = params["w1"].shape[1]

    weight_args = _fold_params(params, compute_dtype)
    weight_bytes = sum(int(a.size) * a.dtype.itemsize for a in weight_args)

    budget = _vmem_budget_bytes()

    # ---- Batch tile: derived from the VMEM budget (resident single-buffered
    #      weights + double-buffered x/eps/out tiles + f32 intermediates per row).
    io_row = 2 * 4 * (n_input + n_latent + _OUT_LANES)
    interm_row = 4 * (3 * n_hidden + 8 * n_latent + 5 * n_input)
    per_row = io_row + interm_row
    b_ceil = _round_up(max(B, 8), 8)
    if tile_b is None:
        avail = max(budget - weight_bytes, 8 * per_row)
        tb = min(1024, (avail // per_row) // 8 * 8, b_ceil)
        tb = max(tb, 8)
    else:
        tb = max(8, min(_round_up(tile_b, 8), b_ceil))
    n_tiles = -(-B // tb)   # ceil(B / tb): final tile may be partial (rows masked)

    out_shape = jax.ShapeDtypeStruct((B, _OUT_LANES), jnp.float32)
    out_spec = pl.BlockSpec((tb, _OUT_LANES), lambda i: (i, 0))

    # ---- Scheduler hint.
    flops = 6 * B * n_hidden * (n_input + n_latent)
    transcendentals = B * (3 * n_latent + n_input)
    bytes_accessed = (int(x.size) * x.dtype.itemsize + int(eps.size) * 4
                      + weight_bytes + B * _OUT_LANES * 4)
    cost = pl.CostEstimate(flops=int(flops), transcendentals=int(transcendentals),
                           bytes_accessed=int(bytes_accessed))

    def build_call(single_buffer_weights):
        def wspec(a):
            nd = a.ndim
            imap = lambda i, _nd=nd: (0,) * _nd
            if single_buffer_weights:
                # Constant index_map => fetched once; one VMEM buffer is enough.
                return pl.BlockSpec(a.shape, imap, pipeline_mode=pl.Buffered(1))
            return pl.BlockSpec(a.shape, imap)

        in_specs = (
            [pl.BlockSpec((tb, n_input), lambda i: (i, 0)),
             pl.BlockSpec((tb, n_latent), lambda i: (i, 0))]
            + [wspec(a) for a in weight_args]
        )
        return pl.pallas_call(
            gaussian_vae_kernel,
            grid=(n_tiles,),
            in_specs=in_specs,
            out_specs=out_spec,
            out_shape=out_shape,
            compiler_params=pltpu.CompilerParams(
                dimension_semantics=("parallel",),   # megacore-shards batch tiles
                vmem_limit_bytes=int(budget),
            ),
            cost_estimate=cost,
        )

    try:
        out = build_call(True)(x, eps, *weight_args)
    except Exception:
        # Fallback for JAX versions without pipeline_mode= / Buffered(1):
        # identical semantics, just default double-buffered resident weights.
        out = build_call(False)(x, eps, *weight_args)

    # Match torch shapes: (batch,) vectors plus the constant 0.0.
    return out[:, 0], out[:, 1], 0.0


if __name__ == "__main__":
    B, n_input, n_hidden, n_latent = 16, 256, 128, 16

    key = jax.random.PRNGKey(0)
    k_x, k_eps, k_params = jax.random.split(key, 3)

    x = jax.random.normal(k_x, (B, n_input), jnp.float32)
    eps = jax.random.normal(k_eps, (B, n_latent), jnp.float32)
    params = init_params(k_params, n_input, n_hidden, n_latent)

    # tile_b=8 exercises a multi-tile (2-step) pipelined grid at this tiny batch.
    reconst_loss, kl, extra = gaussian_vae_forward(x, eps, params, tile_b=8)
    jax.block_until_ready((reconst_loss, kl))

    assert reconst_loss.shape == (B,)
    assert kl.shape == (B,)
    assert extra == 0.0
    assert bool(jnp.all(jnp.isfinite(reconst_loss)))
    assert bool(jnp.all(jnp.isfinite(kl)))

    print("KERNEL_OK")
</pallas_src>

<mosaic_0001>
module attributes {stable_mosaic.version = 11 : i64} {
  func.func @gaussian_vae_kernel(%arg0: i32, %arg1: memref<8x256xf32, #tpu.memory_space<vmem>>, %arg2: memref<8x16xf32, #tpu.memory_space<vmem>>, %arg3: memref<256x128xbf16, #tpu.memory_space<vmem>>, %arg4: memref<1x128xf32, #tpu.memory_space<vmem>>, %arg5: memref<128x16xbf16, #tpu.memory_space<vmem>>, %arg6: memref<1x16xf32, #tpu.memory_space<vmem>>, %arg7: memref<128x16xbf16, #tpu.memory_space<vmem>>, %arg8: memref<1x16xf32, #tpu.memory_space<vmem>>, %arg9: memref<16x128xbf16, #tpu.memory_space<vmem>>, %arg10: memref<1x128xf32, #tpu.memory_space<vmem>>, %arg11: memref<128x256xbf16, #tpu.memory_space<vmem>>, %arg12: memref<1x256xf32, #tpu.memory_space<vmem>>, %arg13: memref<128x256xbf16, #tpu.memory_space<vmem>>, %arg14: memref<1x256xf32, #tpu.memory_space<vmem>>, %arg15: memref<8x8xf32, #tpu.memory_space<vmem>>) attributes {dimension_semantics = [#tpu.dimension_semantics<parallel>], iteration_bounds = array<i64: 2>, scalar_prefetch = 0 : i64, scratch_operands = 0 : i64, tpu.core_type = #tpu.core_type<tc>, window_params = [{transform_indices = @transform_0, window_bounds = array<i64: 8, 256>}, {transform_indices = @transform_1, window_bounds = array<i64: 8, 16>}, {pipeline_mode = #tpu.pipeline_mode<synchronous>, transform_indices = @transform_2, window_bounds = array<i64: 256, 128>}, {pipeline_mode = #tpu.pipeline_mode<synchronous>, transform_indices = @transform_3, window_bounds = array<i64: 1, 128>}, {pipeline_mode = #tpu.pipeline_mode<synchronous>, transform_indices = @transform_4, window_bounds = array<i64: 128, 16>}, {pipeline_mode = #tpu.pipeline_mode<synchronous>, transform_indices = @transform_5, window_bounds = array<i64: 1, 16>}, {pipeline_mode = #tpu.pipeline_mode<synchronous>, transform_indices = @transform_6, window_bounds = array<i64: 128, 16>}, {pipeline_mode = #tpu.pipeline_mode<synchronous>, transform_indices = @transform_7, window_bounds = array<i64: 1, 16>}, {pipeline_mode = #tpu.pipeline_mode<synchronous>, transform_indices = @transform_8, window_bounds = array<i64: 16, 128>}, {pipeline_mode = #tpu.pipeline_mode<synchronous>, transform_indices = @transform_9, window_bounds = array<i64: 1, 128>}, {pipeline_mode = #tpu.pipeline_mode<synchronous>, transform_indices = @transform_10, window_bounds = array<i64: 128, 256>}, {pipeline_mode = #tpu.pipeline_mode<synchronous>, transform_indices = @transform_11, window_bounds = array<i64: 1, 256>}, {pipeline_mode = #tpu.pipeline_mode<synchronous>, transform_indices = @transform_12, window_bounds = array<i64: 128, 256>}, {pipeline_mode = #tpu.pipeline_mode<synchronous>, transform_indices = @transform_13, window_bounds = array<i64: 1, 256>}, {transform_indices = @transform_14, window_bounds = array<i64: 8, 8>}]} {
    %c0 = arith.constant 0 : index
    %c0_0 = arith.constant 0 : index
    %0 = vector.load %arg1[%c0, %c0_0] : memref<8x256xf32, #tpu.memory_space<vmem>>, vector<8x256xf32>
    %c0_1 = arith.constant 0 : index
    %c0_2 = arith.constant 0 : index
    %1 = vector.load %arg2[%c0_1, %c0_2] : memref<8x16xf32, #tpu.memory_space<vmem>>, vector<8x16xf32>
    %2 = arith.truncf %0 : vector<8x256xf32> to vector<8x256xbf16>
    %c0_3 = arith.constant 0 : index
    %c0_4 = arith.constant 0 : index
    %3 = vector.load %arg3[%c0_3, %c0_4] : memref<256x128xbf16, #tpu.memory_space<vmem>>, vector<256x128xbf16>
    %cst = arith.constant dense<0.000000e+00> : vector<8x128xf32>
    %4 = tpu.matmul %2, %3, %cst {dimension_numbers = #tpu.dot_dimension_numbers<[1], [0], [0], [1], [0, 0, 1, 1], [], []>} : vector<8x256xbf16>, vector<256x128xbf16>, vector<8x128xf32> -> vector<8x128xf32>
    %c0_5 = arith.constant 0 : index
    %c0_6 = arith.constant 0 : index
    %5 = vector.load %arg4[%c0_5, %c0_6] : memref<1x128xf32, #tpu.memory_space<vmem>>, vector<1x128xf32>
    %6 = vector.broadcast %5 : vector<1x128xf32> to vector<8x128xf32>
    %7 = arith.addf %4, %6 : vector<8x128xf32>
    %cst_7 = arith.constant 0.000000e+00 : f32
    %8 = vector.broadcast %cst_7 : f32 to vector<8x128xf32>
    %9 = arith.maximumf %7, %8 : vector<8x128xf32>
    %10 = arith.truncf %9 : vector<8x128xf32> to vector<8x128xbf16>
    %c0_8 = arith.constant 0 : index
    %c0_9 = arith.constant 0 : index
    %11 = vector.load %arg5[%c0_8, %c0_9] : memref<128x16xbf16, #tpu.memory_space<vmem>>, vector<128x16xbf16>
    %cst_10 = arith.constant dense<0.000000e+00> : vector<8x16xf32>
    %12 = tpu.matmul %10, %11, %cst_10 {dimension_numbers = #tpu.dot_dimension_numbers<[1], [0], [0], [1], [0, 0, 1, 1], [], []>} : vector<8x128xbf16>, vector<128x16xbf16>, vector<8x16xf32> -> vector<8x16xf32>
    %c0_11 = arith.constant 0 : index
    %c0_12 = arith.constant 0 : index
    %13 = vector.load %arg6[%c0_11, %c0_12] : memref<1x16xf32, #tpu.memory_space<vmem>>, vector<1x16xf32>
    %14 = vector.broadcast %13 : vector<1x16xf32> to vector<8x16xf32>
    %15 = arith.addf %12, %14 : vector<8x16xf32>
    %c0_13 = arith.constant 0 : index
    %c0_14 = arith.constant 0 : index
    %16 = vector.load %arg7[%c0_13, %c0_14] : memref<128x16xbf16, #tpu.memory_space<vmem>>, vector<128x16xbf16>
    %cst_15 = arith.constant dense<0.000000e+00> : vector<8x16xf32>
    %17 = tpu.matmul %10, %16, %cst_15 {dimension_numbers = #tpu.dot_dimension_numbers<[1], [0], [0], [1], [0, 0, 1, 1], [], []>} : vector<8x128xbf16>, vector<128x16xbf16>, vector<8x16xf32> -> vector<8x16xf32>
    %c0_16 = arith.constant 0 : index
    %c0_17 = arith.constant 0 : index
    %18 = vector.load %arg8[%c0_16, %c0_17] : memref<1x16xf32, #tpu.memory_space<vmem>>, vector<1x16xf32>
    %19 = vector.broadcast %18 : vector<1x16xf32> to vector<8x16xf32>
    %20 = arith.addf %17, %19 : vector<8x16xf32>
    %21 = math.exp %20 : vector<8x16xf32>
    %cst_18 = arith.constant 9.99999974E-5 : f32
    %22 = vector.broadcast %cst_18 : f32 to vector<8x16xf32>
    %23 = arith.addf %21, %22 : vector<8x16xf32>
    %24 = math.sqrt %23 : vector<8x16xf32>
    %25 = arith.mulf %24, %1 : vector<8x16xf32>
    %26 = arith.addf %15, %25 : vector<8x16xf32>
    %27 = arith.truncf %26 : vector<8x16xf32> to vector<8x16xbf16>
    %c0_19 = arith.constant 0 : index
    %c0_20 = arith.constant 0 : index
    %28 = vector.load %arg9[%c0_19, %c0_20] : memref<16x128xbf16, #tpu.memory_space<vmem>>, vector<16x128xbf16>
    %cst_21 = arith.constant dense<0.000000e+00> : vector<8x128xf32>
    %29 = tpu.matmul %27, %28, %cst_21 {dimension_numbers = #tpu.dot_dimension_numbers<[1], [0], [0], [1], [0, 0, 1, 1], [], []>} : vector<8x16xbf16>, vector<16x128xbf16>, vector<8x128xf32> -> vector<8x128xf32>
    %c0_22 = arith.constant 0 : index
    %c0_23 = arith.constant 0 : index
    %30 = vector.load %arg10[%c0_22, %c0_23] : memref<1x128xf32, #tpu.memory_space<vmem>>, vector<1x128xf32>
    %31 = vector.broadcast %30 : vector<1x128xf32> to vector<8x128xf32>
    %32 = arith.addf %29, %31 : vector<8x128xf32>
    %cst_24 = arith.constant 0.000000e+00 : f32
    %33 = vector.broadcast %cst_24 : f32 to vector<8x128xf32>
    %34 = arith.maximumf %32, %33 : vector<8x128xf32>
    %35 = arith.truncf %34 : vector<8x128xf32> to vector<8x128xbf16>
    %c0_25 = arith.constant 0 : index
    %c0_26 = arith.constant 0 : index
    %36 = vector.load %arg11[%c0_25, %c0_26] : memref<128x256xbf16, #tpu.memory_space<vmem>>, vector<128x256xbf16>
    %cst_27 = arith.constant dense<0.000000e+00> : vector<8x256xf32>
    %37 = tpu.matmul %35, %36, %cst_27 {dimension_numbers = #tpu.dot_dimension_numbers<[1], [0], [0], [1], [0, 0, 1, 1], [], []>} : vector<8x128xbf16>, vector<128x256xbf16>, vector<8x256xf32> -> vector<8x256xf32>
    %c0_28 = arith.constant 0 : index
    %c0_29 = arith.constant 0 : index
    %38 = vector.load %arg12[%c0_28, %c0_29] : memref<1x256xf32, #tpu.memory_space<vmem>>, vector<1x256xf32>
    %39 = vector.broadcast %38 : vector<1x256xf32> to vector<8x256xf32>
    %40 = arith.addf %37, %39 : vector<8x256xf32>
    %c0_30 = arith.constant 0 : index
    %c0_31 = arith.constant 0 : index
    %41 = vector.load %arg13[%c0_30, %c0_31] : memref<128x256xbf16, #tpu.memory_space<vmem>>, vector<128x256xbf16>
    %cst_32 = arith.constant dense<0.000000e+00> : vector<8x256xf32>
    %42 = tpu.matmul %35, %41, %cst_32 {dimension_numbers = #tpu.dot_dimension_numbers<[1], [0], [0], [1], [0, 0, 1, 1], [], []>} : vector<8x128xbf16>, vector<128x256xbf16>, vector<8x256xf32> -> vector<8x256xf32>
    %c0_33 = arith.constant 0 : index
    %c0_34 = arith.constant 0 : index
    %43 = vector.load %arg14[%c0_33, %c0_34] : memref<1x256xf32, #tpu.memory_space<vmem>>, vector<1x256xf32>
    %44 = vector.broadcast %43 : vector<1x256xf32> to vector<8x256xf32>
    %45 = arith.addf %42, %44 : vector<8x256xf32>
    %46 = arith.mulf %15, %15 : vector<8x16xf32>
    %47 = arith.addf %23, %46 : vector<8x16xf32>
    %cst_35 = arith.constant 1.000000e+00 : f32
    %48 = vector.broadcast %cst_35 : f32 to vector<8x16xf32>
    %49 = arith.subf %47, %48 : vector<8x16xf32>
    %cst_36 = arith.constant 5.000000e-01 : f32
    %50 = vector.broadcast %cst_36 : f32 to vector<8x16xf32>
    %51 = arith.mulf %50, %49 : vector<8x16xf32>
    %52 = math.log %23 : vector<8x16xf32>
    %cst_37 = arith.constant 5.000000e-01 : f32
    %53 = vector.broadcast %cst_37 : f32 to vector<8x16xf32>
    %54 = arith.mulf %53, %52 : vector<8x16xf32>
    %55 = arith.subf %51, %54 : vector<8x16xf32>
    %cst_38 = arith.constant dense<0.000000e+00> : vector<8xf32>
    %56 = vector.multi_reduction <add>, %55, %cst_38 [1] : vector<8x16xf32> to vector<8xf32>
    %57 = vector.shape_cast %56 : vector<8xf32> to vector<8x1xf32>
    %58 = arith.subf %0, %40 : vector<8x256xf32>
    %59 = arith.mulf %58, %58 : vector<8x256xf32>
    %cst_39 = arith.constant 0.000000e+00 : f32
    %60 = vector.broadcast %cst_39 : f32 to vector<8x256xf32>
    %61 = arith.subf %60, %45 : vector<8x256xf32>
    %62 = math.exp %61 : vector<8x256xf32>
    %63 = arith.mulf %59, %62 : vector<8x256xf32>
    %64 = arith.addf %63, %45 : vector<8x256xf32>
    %cst_40 = arith.constant dense<0.000000e+00> : vector<8xf32>
    %65 = vector.multi_reduction <add>, %64, %cst_40 [1] : vector<8x256xf32> to vector<8xf32>
    %66 = vector.shape_cast %65 : vector<8xf32> to vector<8x1xf32>
    %cst_41 = arith.constant 5.000000e-01 : f32
    %67 = vector.broadcast %cst_41 : f32 to vector<8x1xf32>
    %68 = arith.mulf %67, %66 : vector<8x1xf32>
    %cst_42 = arith.constant 235.24826 : f32
    %69 = vector.broadcast %cst_42 : f32 to vector<8x1xf32>
    %70 = arith.addf %68, %69 : vector<8x1xf32>
    %71 = tpu.iota {dimensions = array<i32: 1>} : vector<8x8xi32>
    %c0_i32 = arith.constant 0 : i32
    %72 = vector.broadcast %c0_i32 : i32 to vector<8x8xi32>
    %73 = arith.cmpi eq, %71, %72 : vector<8x8xi32>
    %c1_i32 = arith.constant 1 : i32
    %74 = vector.broadcast %c1_i32 : i32 to vector<8x8xi32>
    %75 = arith.cmpi eq, %71, %74 : vector<8x8xi32>
    %cst_43 = arith.constant 0.000000e+00 : f32
    %76 = vector.shape_cast %57 : vector<8x1xf32> to vector<8x1xf32>
    %77 = vector.broadcast %76 : vector<8x1xf32> to vector<8x8xf32>
    %78 = vector.broadcast %cst_43 : f32 to vector<8x8xf32>
    %79 = arith.select %75, %77, %78 : vector<8x8xi1>, vector<8x8xf32>
    %80 = vector.shape_cast %70 : vector<8x1xf32> to vector<8x1xf32>
    %81 = vector.broadcast %80 : vector<8x1xf32> to vector<8x8xf32>
    %82 = arith.select %73, %81, %79 : vector<8x8xi1>, vector<8x8xf32>
    %c0_44 = arith.constant 0 : index
    %c0_45 = arith.constant 0 : index
    %83 = vector.load %arg15[%c0_44, %c0_45] : memref<8x8xf32, #tpu.memory_space<vmem>>, vector<8x8xf32>
    tpu.vector_store %arg15[%c0_44, %c0_45], %82 {strides = array<i32>} : memref<8x8xf32, #tpu.memory_space<vmem>>, vector<8x8xf32>,
    return
  }
  func.func @transform_0(%arg0: i32) -> (i32, i32) {
    %c0_i32 = arith.constant 0 : i32
    %c0_i32_0 = arith.constant 0 : i32
    return %arg0, %c0_i32 : i32, i32
  }
  func.func @transform_1(%arg0: i32) -> (i32, i32) {
    %c0_i32 = arith.constant 0 : i32
    %c0_i32_0 = arith.constant 0 : i32
    return %arg0, %c0_i32 : i32, i32
  }
  func.func @transform_2(%arg0: i32) -> (i32, i32) {
    %c0_i32 = arith.constant 0 : i32
    %c0_i32_0 = arith.constant 0 : i32
    %c0_i32_1 = arith.constant 0 : i32
    return %c0_i32, %c0_i32_0 : i32, i32
  }
  func.func @transform_3(%arg0: i32) -> (i32, i32) {
    %c0_i32 = arith.constant 0 : i32
    %c0_i32_0 = arith.constant 0 : i32
    %c0_i32_1 = arith.constant 0 : i32
    return %c0_i32, %c0_i32_0 : i32, i32
  }
  func.func @transform_4(%arg0: i32) -> (i32, i32) {
    %c0_i32 = arith.constant 0 : i32
    %c0_i32_0 = arith.constant 0 : i32
    %c0_i32_1 = arith.constant 0 : i32
    return %c0_i32, %c0_i32_0 : i32, i32
  }
  func.func @transform_5(%arg0: i32) -> (i32, i32) {
    %c0_i32 = arith.constant 0 : i32
    %c0_i32_0 = arith.constant 0 : i32
    %c0_i32_1 = arith.constant 0 : i32
    return %c0_i32, %c0_i32_0 : i32, i32
  }
  func.func @transform_6(%arg0: i32) -> (i32, i32) {
    %c0_i32 = arith.constant 0 : i32
    %c0_i32_0 = arith.constant 0 : i32
    %c0_i32_1 = arith.constant 0 : i32
    return %c0_i32, %c0_i32_0 : i32, i32
  }
  func.func @transform_7(%arg0: i32) -> (i32, i32) {
    %c0_i32 = arith.constant 0 : i32
    %c0_i32_0 = arith.constant 0 : i32
    %c0_i32_1 = arith.constant 0 : i32
    return %c0_i32, %c0_i32_0 : i32, i32
  }
  func.func @transform_8(%arg0: i32) -> (i32, i32) {
    %c0_i32 = arith.constant 0 : i32
    %c0_i32_0 = arith.constant 0 : i32
    %c0_i32_1 = arith.constant 0 : i32
    return %c0_i32, %c0_i32_0 : i32, i32
  }
  func.func @transform_9(%arg0: i32) -> (i32, i32) {
    %c0_i32 = arith.constant 0 : i32
    %c0_i32_0 = arith.constant 0 : i32
    %c0_i32_1 = arith.constant 0 : i32
    return %c0_i32, %c0_i32_0 : i32, i32
  }
  func.func @transform_10(%arg0: i32) -> (i32, i32) {
    %c0_i32 = arith.constant 0 : i32
    %c0_i32_0 = arith.constant 0 : i32
    %c0_i32_1 = arith.constant 0 : i32
    return %c0_i32, %c0_i32_0 : i32, i32
  }
  func.func @transform_11(%arg0: i32) -> (i32, i32) {
    %c0_i32 = arith.constant 0 : i32
    %c0_i32_0 = arith.constant 0 : i32
    %c0_i32_1 = arith.constant 0 : i32
    return %c0_i32, %c0_i32_0 : i32, i32
  }
  func.func @transform_12(%arg0: i32) -> (i32, i32) {
    %c0_i32 = arith.constant 0 : i32
    %c0_i32_0 = arith.constant 0 : i32
    %c0_i32_1 = arith.constant 0 : i32
    return %c0_i32, %c0_i32_0 : i32, i32
  }
  func.func @transform_13(%arg0: i32) -> (i32, i32) {
    %c0_i32 = arith.constant 0 : i32
    %c0_i32_0 = arith.constant 0 : i32
    %c0_i32_1 = arith.constant 0 : i32
    return %c0_i32, %c0_i32_0 : i32, i32
  }
  func.func @transform_14(%arg0: i32) -> (i32, i32) {
    %c0_i32 = arith.constant 0 : i32
    %c0_i32_0 = arith.constant 0 : i32
    return %arg0, %c0_i32 : i32, i32
  }
}

module attributes {stable_mosaic.version = 11 : i64} {
  func.func @gaussian_vae_kernel(%arg0: i32, %arg1: memref<8x256xf32, #tpu.memory_space<vmem>>, %arg2: memref<8x16xf32, #tpu.memory_space<vmem>>, %arg3: memref<256x128xbf16, #tpu.memory_space<vmem>>, %arg4: memref<1x128xf32, #tpu.memory_space<vmem>>, %arg5: memref<128x16xbf16, #tpu.memory_space<vmem>>, %arg6: memref<1x16xf32, #tpu.memory_space<vmem>>, %arg7: memref<128x16xbf16, #tpu.memory_space<vmem>>, %arg8: memref<1x16xf32, #tpu.memory_space<vmem>>, %arg9: memref<16x128xbf16, #tpu.memory_space<vmem>>, %arg10: memref<1x128xf32, #tpu.memory_space<vmem>>, %arg11: memref<128x256xbf16, #tpu.memory_space<vmem>>, %arg12: memref<1x256xf32, #tpu.memory_space<vmem>>, %arg13: memref<128x256xbf16, #tpu.memory_space<vmem>>, %arg14: memref<1x256xf32, #tpu.memory_space<vmem>>, %arg15: memref<8x8xf32, #tpu.memory_space<vmem>>) attributes {dimension_semantics = [#tpu.dimension_semantics<parallel>], iteration_bounds = array<i64: 2>, scalar_prefetch = 0 : i64, scratch_operands = 0 : i64, tpu.core_type = #tpu.core_type<tc>, window_params = [{transform_indices = @transform_0, window_bounds = array<i64: 8, 256>}, {transform_indices = @transform_1, window_bounds = array<i64: 8, 16>}, {pipeline_mode = #tpu.pipeline_mode<synchronous>, transform_indices = @transform_2, window_bounds = array<i64: 256, 128>}, {pipeline_mode = #tpu.pipeline_mode<synchronous>, transform_indices = @transform_3, window_bounds = array<i64: 1, 128>}, {pipeline_mode = #tpu.pipeline_mode<synchronous>, transform_indices = @transform_4, window_bounds = array<i64: 128, 16>}, {pipeline_mode = #tpu.pipeline_mode<synchronous>, transform_indices = @transform_5, window_bounds = array<i64: 1, 16>}, {pipeline_mode = #tpu.pipeline_mode<synchronous>, transform_indices = @transform_6, window_bounds = array<i64: 128, 16>}, {pipeline_mode = #tpu.pipeline_mode<synchronous>, transform_indices = @transform_7, window_bounds = array<i64: 1, 16>}, {pipeline_mode = #tpu.pipeline_mode<synchronous>, transform_indices = @transform_8, window_bounds = array<i64: 16, 128>}, {pipeline_mode = #tpu.pipeline_mode<synchronous>, transform_indices = @transform_9, window_bounds = array<i64: 1, 128>}, {pipeline_mode = #tpu.pipeline_mode<synchronous>, transform_indices = @transform_10, window_bounds = array<i64: 128, 256>}, {pipeline_mode = #tpu.pipeline_mode<synchronous>, transform_indices = @transform_11, window_bounds = array<i64: 1, 256>}, {pipeline_mode = #tpu.pipeline_mode<synchronous>, transform_indices = @transform_12, window_bounds = array<i64: 128, 256>}, {pipeline_mode = #tpu.pipeline_mode<synchronous>, transform_indices = @transform_13, window_bounds = array<i64: 1, 256>}, {transform_indices = @transform_14, window_bounds = array<i64: 8, 8>}]} {
    %c0 = arith.constant 0 : index
    %c0_0 = arith.constant 0 : index
    %0 = vector.load %arg1[%c0, %c0_0] : memref<8x256xf32, #tpu.memory_space<vmem>>, vector<8x256xf32>
    %c0_1 = arith.constant 0 : index
    %c0_2 = arith.constant 0 : index
    %1 = vector.load %arg2[%c0_1, %c0_2] : memref<8x16xf32, #tpu.memory_space<vmem>>, vector<8x16xf32>
    %2 = arith.truncf %0 : vector<8x256xf32> to vector<8x256xbf16>
    %c0_3 = arith.constant 0 : index
    %c0_4 = arith.constant 0 : index
    %3 = vector.load %arg3[%c0_3, %c0_4] : memref<256x128xbf16, #tpu.memory_space<vmem>>, vector<256x128xbf16>
    %cst = arith.constant dense<0.000000e+00> : vector<8x128xf32>
    %4 = tpu.matmul %2, %3, %cst {dimension_numbers = #tpu.dot_dimension_numbers<[1], [0], [0], [1], [0, 0, 1, 1], [], []>} : vector<8x256xbf16>, vector<256x128xbf16>, vector<8x128xf32> -> vector<8x128xf32>
    %c0_5 = arith.constant 0 : index
    %c0_6 = arith.constant 0 : index
    %5 = vector.load %arg4[%c0_5, %c0_6] : memref<1x128xf32, #tpu.memory_space<vmem>>, vector<1x128xf32>
    %6 = vector.broadcast %5 : vector<1x128xf32> to vector<8x128xf32>
    %7 = arith.addf %4, %6 : vector<8x128xf32>
    %cst_7 = arith.constant 0.000000e+00 : f32
    %8 = vector.broadcast %cst_7 : f32 to vector<8x128xf32>
    %9 = arith.maximumf %7, %8 : vector<8x128xf32>
    %10 = arith.truncf %9 : vector<8x128xf32> to vector<8x128xbf16>
    %c0_8 = arith.constant 0 : index
    %c0_9 = arith.constant 0 : index
    %11 = vector.load %arg5[%c0_8, %c0_9] : memref<128x16xbf16, #tpu.memory_space<vmem>>, vector<128x16xbf16>
    %cst_10 = arith.constant dense<0.000000e+00> : vector<8x16xf32>
    %12 = tpu.matmul %10, %11, %cst_10 {dimension_numbers = #tpu.dot_dimension_numbers<[1], [0], [0], [1], [0, 0, 1, 1], [], []>} : vector<8x128xbf16>, vector<128x16xbf16>, vector<8x16xf32> -> vector<8x16xf32>
    %c0_11 = arith.constant 0 : index
    %c0_12 = arith.constant 0 : index
    %13 = vector.load %arg6[%c0_11, %c0_12] : memref<1x16xf32, #tpu.memory_space<vmem>>, vector<1x16xf32>
    %14 = vector.broadcast %13 : vector<1x16xf32> to vector<8x16xf32>
    %15 = arith.addf %12, %14 : vector<8x16xf32>
    %c0_13 = arith.constant 0 : index
    %c0_14 = arith.constant 0 : index
    %16 = vector.load %arg7[%c0_13, %c0_14] : memref<128x16xbf16, #tpu.memory_space<vmem>>, vector<128x16xbf16>
    %cst_15 = arith.constant dense<0.000000e+00> : vector<8x16xf32>
    %17 = tpu.matmul %10, %16, %cst_15 {dimension_numbers = #tpu.dot_dimension_numbers<[1], [0], [0], [1], [0, 0, 1, 1], [], []>} : vector<8x128xbf16>, vector<128x16xbf16>, vector<8x16xf32> -> vector<8x16xf32>
    %c0_16 = arith.constant 0 : index
    %c0_17 = arith.constant 0 : index
    %18 = vector.load %arg8[%c0_16, %c0_17] : memref<1x16xf32, #tpu.memory_space<vmem>>, vector<1x16xf32>
    %19 = vector.broadcast %18 : vector<1x16xf32> to vector<8x16xf32>
    %20 = arith.addf %17, %19 : vector<8x16xf32>
    %21 = math.exp %20 : vector<8x16xf32>
    %cst_18 = arith.constant 9.99999974E-5 : f32
    %22 = vector.broadcast %cst_18 : f32 to vector<8x16xf32>
    %23 = arith.addf %21, %22 : vector<8x16xf32>
    %24 = math.sqrt %23 : vector<8x16xf32>
    %25 = arith.mulf %24, %1 : vector<8x16xf32>
    %26 = arith.addf %15, %25 : vector<8x16xf32>
    %27 = arith.truncf %26 : vector<8x16xf32> to vector<8x16xbf16>
    %c0_19 = arith.constant 0 : index
    %c0_20 = arith.constant 0 : index
    %28 = vector.load %arg9[%c0_19, %c0_20] : memref<16x128xbf16, #tpu.memory_space<vmem>>, vector<16x128xbf16>
    %cst_21 = arith.constant dense<0.000000e+00> : vector<8x128xf32>
    %29 = tpu.matmul %27, %28, %cst_21 {dimension_numbers = #tpu.dot_dimension_numbers<[1], [0], [0], [1], [0, 0, 1, 1], [], []>} : vector<8x16xbf16>, vector<16x128xbf16>, vector<8x128xf32> -> vector<8x128xf32>
    %c0_22 = arith.constant 0 : index
    %c0_23 = arith.constant 0 : index
    %30 = vector.load %arg10[%c0_22, %c0_23] : memref<1x128xf32, #tpu.memory_space<vmem>>, vector<1x128xf32>
    %31 = vector.broadcast %30 : vector<1x128xf32> to vector<8x128xf32>
    %32 = arith.addf %29, %31 : vector<8x128xf32>
    %cst_24 = arith.constant 0.000000e+00 : f32
    %33 = vector.broadcast %cst_24 : f32 to vector<8x128xf32>
    %34 = arith.maximumf %32, %33 : vector<8x128xf32>
    %35 = arith.truncf %34 : vector<8x128xf32> to vector<8x128xbf16>
    %c0_25 = arith.constant 0 : index
    %c0_26 = arith.constant 0 : index
    %36 = vector.load %arg11[%c0_25, %c0_26] : memref<128x256xbf16, #tpu.memory_space<vmem>>, vector<128x256xbf16>
    %cst_27 = arith.constant dense<0.000000e+00> : vector<8x256xf32>
    %37 = tpu.matmul %35, %36, %cst_27 {dimension_numbers = #tpu.dot_dimension_numbers<[1], [0], [0], [1], [0, 0, 1, 1], [], []>} : vector<8x128xbf16>, vector<128x256xbf16>, vector<8x256xf32> -> vector<8x256xf32>
    %c0_28 = arith.constant 0 : index
    %c0_29 = arith.constant 0 : index
    %38 = vector.load %arg12[%c0_28, %c0_29] : memref<1x256xf32, #tpu.memory_space<vmem>>, vector<1x256xf32>
    %39 = vector.broadcast %38 : vector<1x256xf32> to vector<8x256xf32>
    %40 = arith.addf %37, %39 : vector<8x256xf32>
    %c0_30 = arith.constant 0 : index
    %c0_31 = arith.constant 0 : index
    %41 = vector.load %arg13[%c0_30, %c0_31] : memref<128x256xbf16, #tpu.memory_space<vmem>>, vector<128x256xbf16>
    %cst_32 = arith.constant dense<0.000000e+00> : vector<8x256xf32>
    %42 = tpu.matmul %35, %41, %cst_32 {dimension_numbers = #tpu.dot_dimension_numbers<[1], [0], [0], [1], [0, 0, 1, 1], [], []>} : vector<8x128xbf16>, vector<128x256xbf16>, vector<8x256xf32> -> vector<8x256xf32>
    %c0_33 = arith.constant 0 : index
    %c0_34 = arith.constant 0 : index
    %43 = vector.load %arg14[%c0_33, %c0_34] : memref<1x256xf32, #tpu.memory_space<vmem>>, vector<1x256xf32>
    %44 = vector.broadcast %43 : vector<1x256xf32> to vector<8x256xf32>
    %45 = arith.addf %42, %44 : vector<8x256xf32>
    %46 = arith.mulf %15, %15 : vector<8x16xf32>
    %47 = arith.addf %23, %46 : vector<8x16xf32>
    %cst_35 = arith.constant 1.000000e+00 : f32
    %48 = vector.broadcast %cst_35 : f32 to vector<8x16xf32>
    %49 = arith.subf %47, %48 : vector<8x16xf32>
    %cst_36 = arith.constant 5.000000e-01 : f32
    %50 = vector.broadcast %cst_36 : f32 to vector<8x16xf32>
    %51 = arith.mulf %50, %49 : vector<8x16xf32>
    %52 = math.log %23 : vector<8x16xf32>
    %cst_37 = arith.constant 5.000000e-01 : f32
    %53 = vector.broadcast %cst_37 : f32 to vector<8x16xf32>
    %54 = arith.mulf %53, %52 : vector<8x16xf32>
    %55 = arith.subf %51, %54 : vector<8x16xf32>
    %cst_38 = arith.constant dense<0.000000e+00> : vector<8xf32>
    %56 = vector.multi_reduction <add>, %55, %cst_38 [1] : vector<8x16xf32> to vector<8xf32>
    %57 = vector.shape_cast %56 : vector<8xf32> to vector<8x1xf32>
    %58 = arith.subf %0, %40 : vector<8x256xf32>
    %59 = arith.mulf %58, %58 : vector<8x256xf32>
    %cst_39 = arith.constant 0.000000e+00 : f32
    %60 = vector.broadcast %cst_39 : f32 to vector<8x256xf32>
    %61 = arith.subf %60, %45 : vector<8x256xf32>
    %62 = math.exp %61 : vector<8x256xf32>
    %63 = arith.mulf %59, %62 : vector<8x256xf32>
    %64 = arith.addf %63, %45 : vector<8x256xf32>
    %cst_40 = arith.constant dense<0.000000e+00> : vector<8xf32>
    %65 = vector.multi_reduction <add>, %64, %cst_40 [1] : vector<8x256xf32> to vector<8xf32>
    %66 = vector.shape_cast %65 : vector<8xf32> to vector<8x1xf32>
    %cst_41 = arith.constant 5.000000e-01 : f32
    %67 = vector.broadcast %cst_41 : f32 to vector<8x1xf32>
    %68 = arith.mulf %67, %66 : vector<8x1xf32>
    %cst_42 = arith.constant 235.24826 : f32
    %69 = vector.broadcast %cst_42 : f32 to vector<8x1xf32>
    %70 = arith.addf %68, %69 : vector<8x1xf32>
    %71 = tpu.iota {dimensions = array<i32: 1>} : vector<8x8xi32>
    %c0_i32 = arith.constant 0 : i32
    %72 = vector.broadcast %c0_i32 : i32 to vector<8x8xi32>
    %73 = arith.cmpi eq, %71, %72 : vector<8x8xi32>
    %c1_i32 = arith.constant 1 : i32
    %74 = vector.broadcast %c1_i32 : i32 to vector<8x8xi32>
    %75 = arith.cmpi eq, %71, %74 : vector<8x8xi32>
    %cst_43 = arith.constant 0.000000e+00 : f32
    %76 = vector.shape_cast %57 : vector<8x1xf32> to vector<8x1xf32>
    %77 = vector.broadcast %76 : vector<8x1xf32> to vector<8x8xf32>
    %78 = vector.broadcast %cst_43 : f32 to vector<8x8xf32>
    %79 = arith.select %75, %77, %78 : vector<8x8xi1>, vector<8x8xf32>
    %80 = vector.shape_cast %70 : vector<8x1xf32> to vector<8x1xf32>
    %81 = vector.broadcast %80 : vector<8x1xf32> to vector<8x8xf32>
    %82 = arith.select %73, %81, %79 : vector<8x8xi1>, vector<8x8xf32>
    %c0_44 = arith.constant 0 : index
    %c0_45 = arith.constant 0 : index
    %83 = vector.load %arg15[%c0_44, %c0_45] : memref<8x8xf32, #tpu.memory_space<vmem>>, vector<8x8xf32>
    tpu.vector_store %arg15[%c0_44, %c0_45], %82 {strides = array<i32>} : memref<8x8xf32, #tpu.memory_space<vmem>>, vector<8x8xf32>,
    return
  }
  func.func @transform_0(%arg0: i32) -> (i32, i32) {
    %c0_i32 = arith.constant 0 : i32
    %c0_i32_0 = arith.constant 0 : i32
    return %arg0, %c0_i32 : i32, i32
  }
  func.func @transform_1(%arg0: i32) -> (i32, i32) {
    %c0_i32 = arith.constant 0 : i32
    %c0_i32_0 = arith.constant 0 : i32
    return %arg0, %c0_i32 : i32, i32
  }
  func.func @transform_2(%arg0: i32) -> (i32, i32) {
    %c0_i32 = arith.constant 0 : i32
    %c0_i32_0 = arith.constant 0 : i32
    %c0_i32_1 = arith.constant 0 : i32
    return %c0_i32, %c0_i32_0 : i32, i32
  }
  func.func @transform_3(%arg0: i32) -> (i32, i32) {
    %c0_i32 = arith.constant 0 : i32
    %c0_i32_0 = arith.constant 0 : i32
    %c0_i32_1 = arith.constant 0 : i32
    return %c0_i32, %c0_i32_0 : i32, i32
  }
  func.func @transform_4(%arg0: i32) -> (i32, i32) {
    %c0_i32 = arith.constant 0 : i32
    %c0_i32_0 = arith.constant 0 : i32
    %c0_i32_1 = arith.constant 0 : i32
    return %c0_i32, %c0_i32_0 : i32, i32
  }
  func.func @transform_5(%arg0: i32) -> (i32, i32) {
    %c0_i32 = arith.constant 0 : i32
    %c0_i32_0 = arith.constant 0 : i32
    %c0_i32_1 = arith.constant 0 : i32
    return %c0_i32, %c0_i32_0 : i32, i32
  }
  func.func @transform_6(%arg0: i32) -> (i32, i32) {
    %c0_i32 = arith.constant 0 : i32
    %c0_i32_0 = arith.constant 0 : i32
    %c0_i32_1 = arith.constant 0 : i32
    return %c0_i32, %c0_i32_0 : i32, i32
  }
  func.func @transform_7(%arg0: i32) -> (i32, i32) {
    %c0_i32 = arith.constant 0 : i32
    %c0_i32_0 = arith.constant 0 : i32
    %c0_i32_1 = arith.constant 0 : i32
    return %c0_i32, %c0_i32_0 : i32, i32
  }
  func.func @transform_8(%arg0: i32) -> (i32, i32) {
    %c0_i32 = arith.constant 0 : i32
    %c0_i32_0 = arith.constant 0 : i32
    %c0_i32_1 = arith.constant 0 : i32
    return %c0_i32, %c0_i32_0 : i32, i32
  }
  func.func @transform_9(%arg0: i32) -> (i32, i32) {
    %c0_i32 = arith.constant 0 : i32
    %c0_i32_0 = arith.constant 0 : i32
    %c0_i32_1 = arith.constant 0 : i32
    return %c0_i32, %c0_i32_0 : i32, i32
  }
  func.func @transform_10(%arg0: i32) -> (i32, i32) {
    %c0_i32 = arith.constant 0 : i32
    %c0_i32_0 = arith.constant 0 : i32
    %c0_i32_1 = arith.constant 0 : i32
    return %c0_i32, %c0_i32_0 : i32, i32
  }
  func.func @transform_11(%arg0: i32) -> (i32, i32) {
    %c0_i32 = arith.constant 0 : i32
    %c0_i32_0 = arith.constant 0 : i32
    %c0_i32_1 = arith.constant 0 : i32
    return %c0_i32, %c0_i32_0 : i32, i32
  }
  func.func @transform_12(%arg0: i32) -> (i32, i32) {
    %c0_i32 = arith.constant 0 : i32
    %c0_i32_0 = arith.constant 0 : i32
    %c0_i32_1 = arith.constant 0 : i32
    return %c0_i32, %c0_i32_0 : i32, i32
  }
  func.func @transform_13(%arg0: i32) -> (i32, i32) {
    %c0_i32 = arith.constant 0 : i32
    %c0_i32_0 = arith.constant 0 : i32
    %c0_i32_1 = arith.constant 0 : i32
    return %c0_i32, %c0_i32_0 : i32, i32
  }
  func.func @transform_14(%arg0: i32) -> (i32, i32) {
    %c0_i32 = arith.constant 0 : i32
    %c0_i32_0 = arith.constant 0 : i32
    return %arg0, %c0_i32 : i32, i32
  }
}

</mosaic_0001>

<bundles_post_ra>
// kernel: tpu_custom_call.1
= control target key start
LH: loop header
LB: loop body
LE: loop exit
PB: predicated region body
PF: predicated region fallthrough
CT: control target
= control target key end

     0   :  { %s2446_s0 = inlined_call_operand.hbm [shape: f32[16,256], index: 0, kind: input, shape index: {}]   ;;  %s2447_s1 = inlined_call_operand.vmem [shape: f32[16,16], index: 1, kind: input, shape index: {}]   ;;  %s2448_s2 = inlined_call_operand.vmem [shape: bf16[256,128], index: 2, kind: input, shape index: {}]   ;;  %s2449_s3 = inlined_call_operand.vmem [shape: f32[1,128], index: 3, kind: input, shape index: {}]   ;;  %s2450_s4 = inlined_call_operand.vmem [shape: bf16[128,16], index: 4, kind: input, shape index: {}]   ;;  %s2451_s5 = inlined_call_operand.hbm [shape: f32[1,16], index: 5, kind: input, shape index: {}]   ;;  %s2452_s6 = inlined_call_operand.vmem [shape: bf16[128,16], index: 6, kind: input, shape index: {}]   ;;  %s2453_s7 = inlined_call_operand.hbm [shape: f32[1,16], index: 7, kind: input, shape index: {}]   ;;  %s2454_s8 = inlined_call_operand.hbm [shape: bf16[16,128], index: 8, kind: input, shape index: {}]   ;;  %s2455_s9 = inlined_call_operand.vmem [shape: f32[1,128], index: 9, kind: input, shape index: {}]   ;;  %s2456_s10 = inlined_call_operand.hbm [shape: bf16[128,256], index: 10, kind: input, shape index: {}]   ;;  %s2457_s11 = inlined_call_operand.vmem [shape: f32[1,256], index: 11, kind: input, shape index: {}]   ;;  %s2458_s12 = inlined_call_operand.hbm [shape: bf16[128,256], index: 12, kind: input, shape index: {}]   ;;  %s2459_s13 = inlined_call_operand.vmem [shape: f32[1,256], index: 13, kind: input, shape index: {}]   ;;  %s2460_s14 = inlined_call_operand.vmem [shape: f32[16,8], index: 14, kind: output, shape index: {}]  }
   0x1   :  { %2461 = sst [smem:[#allocation16_spill]] %s2451_s5 }
   0x2   :  { %2462 = sst [smem:[#allocation17_spill]] %s2454_s8 }
   0x3   :  { %2463 = sst [smem:[#allocation18_spill]] %s2457_s11 }
   0x4   :  { %2464 = sst [smem:[#allocation19_spill]] %s2459_s13 }
   0x5   :  { %2465 = sst [smem:[#allocation20_spill]] %s2460_s14 }
   0x6   :  { %19 = vsyncpa [#allocation3], 0 }
   0x7   :  { %21 = vsyncpa [#allocation3 + $0x1], 0 }
   0x8   :  { %22 = vsyncpa [#allocation5], 0 }
   0x9   :  { %23 = vsyncpa [#allocation8], 0 }
   0xa   :  { %24 = vsyncpa [#allocation11], 0  ;;  %s2148_s29 = smov 0   ;;  %s2150_s30 = smov 0  }
   0xb   :  { %s2152_s15 = smov 0   ;;  %s2154_s16 = smov 0  }
   0xc LB: > { %s2466_s5 = sld [smem:[#allocation16_spill]]  ;;  %s2172_s20 = sadd.s32 4294967295, %s2062_s16   ;;  %s2062_s16 = sphi %s2154_s16, %s2478_s16   ;;  %s2058_s15 = sphi %s2152_s15, %s2477_s15   ;;  %s2054_s30 = sphi %s2150_s30, %s2476_s30   ;;  %s2050_s29 = sphi %s2148_s29, %s2475_s29  }
   0xd   : > { %p1379_p0 = scmp.ge.s32.totalorder %s2062_s16, 1  ;;  %p51_p1 = scmp.eq.s32.totalorder %s2172_s20, 0 }
   0xe   : > { %p365_p2 = scmp.lt.s32.totalorder %s2062_s16, 3  ;;  %s2064_s22 = smov [#allocation4]  }
   0xf   : > { %s388_s23 = sshll.u32 %s2064_s22, 4  ;;  %s2468_s8 = sld [smem:[#allocation17_spill]]  ;;  %s389_s23 = int_to_ptr.vmem [resolvable:$true] %s388_s23 }
  0x10   : > { %p2177_p3 = pnand %p1379_p0, %p365_p2  ;;  %s2065_s28 = smov [#allocation7]  }
  0x11   : > { %s414_s17 = sshll.u32 %s2065_s28, 4  ;;  %s2066_s18 = smov 64   ;;  %s415_s17 = int_to_ptr.vmem [resolvable:$true] %s414_s17 }
  0x12   : > { %s386_s19 = sshll.u32 %s2466_s5, 4  ;;  %p1750_p4 = pneg %p2177_p3  ;;  %s387_s19 = int_to_ptr.hbm [resolvable:$true] %s386_s19 }
  0x13   : > { %s2067_s22 = smov 4   ;;  %s401_s5 = sshll.u32 %s2453_s7, 4  ;;  %s402_s5 = int_to_ptr.hbm [resolvable:$true] %s401_s5 }
  0x14   : > { %p2188_p5 = pnand %p1750_p4, %p51_p1  ;;  %s429_s28 = sshll.u32 %s2456_s10, 4  ;;  %s430_s28 = int_to_ptr.hbm [resolvable:$true] %s429_s28 }
  0x15   : > { %s412_s26 = sshll.u32 %s2468_s8, 4  ;;  %s2068_s8 = smov [#allocation6]   ;;  %s413_s26 = int_to_ptr.hbm [resolvable:$true] %s412_s26 }
  0x16   : > { %1753 = dma.hbm_to_vmem [thread:$0]  (!%p2188_p5), %s387_s19, 16, %s389_s23, [#allocation5]  }
  0x17   : > { %1759 = dma.hbm_to_vmem [thread:$0]  (!%p2188_p5), %s413_s26, 128, %s415_s17, [#allocation8], %s2066_s18, %s2066_s18, %s2067_s22  }
  0x18   : > { %s403_s14 = sshll.u32 %s2068_s8, 4  ;;  %s2069_s19 = smov [#allocation9]   ;;  %s404_s14 = int_to_ptr.vmem [resolvable:$true] %s403_s14 }
  0x19   : > { %1756 = dma.hbm_to_vmem [thread:$0]  (!%p2188_p5), %s402_s5, 16, %s404_s14, [#allocation5]  }
  0x1a   : > { %s431_s23 = sshll.u32 %s2069_s19, 4  ;;  %s2070_s8 = smov 128   ;;  %s432_s23 = int_to_ptr.vmem [resolvable:$true] %s431_s23 }
  0x1b   : > { %s2071_s26 = smov 8   ;;  %s446_s5 = sshll.u32 %s2458_s12, 4  ;;  %s447_s5 = int_to_ptr.hbm [resolvable:$true] %s446_s5 }
  0x1c   : > { %1762 = dma.hbm_to_vmem [thread:$0]  (!%p2188_p5), %s430_s28, 2048, %s432_s23, [#allocation8], %s2070_s8, %s2070_s8, %s2071_s26  }
  0x1d   : > { %s2072_s14 = smov [#allocation10]   ;;  %s2212_s18 = sadd.s32 1, %s2062_s16  }
  0x1e   : > { %s448_s17 = sshll.u32 %s2072_s14, 4  ;;  %s34_s22 = ssub.s32 %s2062_s16, %s2212_s18  ;;  %s449_s17 = int_to_ptr.vmem [resolvable:$true] %s448_s17 }
  0x1f   : > { %1765 = dma.hbm_to_vmem [thread:$0]  (!%p2188_p5), %s447_s5, 2048, %s449_s17, [#allocation11], %s2070_s8, %s2070_s8, %s2071_s26  }
  0x20   : > { %s37_s24 = sadd.s32 1, %s2058_s15  ;;  %p35_p6 = scmp.eq.s32.totalorder %s34_s22, 0 }
  0x21   : > { %p44_p7 = scmp.ne.s32.totalorder %s2058_s15, %s2054_s30  ;;  %p45_p8 = scmp.eq.s32.totalorder %s2062_s16, 0 }
  0x22   : > { %p50_p9 = scmp.ne.s32.totalorder %s2054_s30, %s2050_s29  ;;  %p1775_p12 = scmp.lt.s32.totalorder %s2062_s16, 2 }
  0x23   : > { %s2223_s25 = scalar_select %p35_p6, %s2058_s15, %s37_s24  }
  0x24   : > { %p46_p10 = por %p45_p8, %p44_p7  ;;  %p2227_p11 = por %p51_p1, %p50_p9 }
  0x25   : > { %s465_s27 = sand.u32 1, %s2058_s15   ;;  %s1662_s23 = sshll.u32 %s2062_s16, 4 }
  0x26   : > { %s1386_s19 = sshll.u32 %s465_s27, 4  ;;  %s474_s11 = scalar_lea.hbm %s2446_s0, %s1662_s23 }
  0x27   : > { %s469_s13 = scalar_lea.vmem [#allocation2], %s1386_s19  ;;  %s476_s14 = sshll.u32 %s474_s11, 4  ;;  %s477_s14 = int_to_ptr.hbm [resolvable:$true] %s476_s14 }
  0x28   : > { %s478_s5 = sshll.u32 %s469_s13, 4  ;;  %p2237_p13 = pnand %p1775_p12, %p46_p10  ;;  %s479_s5 = int_to_ptr.vmem [resolvable:$true] %s478_s5 }
  0x29   : > { %s466_s17 = scalar_lea.sflag [#allocation3], %s465_s27  ;;  %s1986_s22 = sshra.s32 %s477_s14, 4  ;;  %s1987_s22 = int_to_ptr.hbm [resolvable:$true] %s1986_s22 }
  0x2a   : > { %s1988_s24 = scalar_lea.hbm %s1987_s22, 16  ;;  %p1990_p2 = pneg %p2237_p13 }
  0x2b   : > { %p1989_p0 = scmp.ne.s32.totalorder %s1987_s22, %s1988_s24  ;;  %s1993_s23 = scalar_lea.hbm %s2446_s0, 32 }
  0x2c   : > { %p1994_p6 = scmp.lt.s32.totalorder %s1987_s22, %s2446_s0  ;;  %p1995_p7 = scmp.lt.s32.totalorder %s1993_s23, %s1988_s24 }
  0x2d   : > { %p1991_p4 = pnand %p1990_p2, %p1989_p0 }
  0x2e   : > { %p1996_p8 = por %p1995_p7, %p1994_p6 }
  0x2f   : > { %p1992_p5 = pneg %p1991_p4 }
  0x31   : > { %p1997_p9 = pnand %p1996_p8, %p1992_p5 }
  0x33   : > { %2000 = shalt.err (!%p1997_p9)
}
  0x34   : > { %1769 = dma.hbm_to_vmem [thread:$0]  (!%p2237_p13), %s477_s14, 256, %s479_s5, %s466_s17  }
  0x35   : > { %494 = sbr.rel (%p2177_p3) target bundleno = 814 (0x32e), region = 76  ;;  %s496_s27 = sand.u32 (!%p2177_p3), 1, %s2054_s30  }
  0x36   : > { %s2254_s11 = sshll.u32 (!%p2177_p3), %s496_s27, 4  ;;  %s497_s13 = scalar_lea.sflag (!%p2177_p3), [#allocation3], %s496_s27 }
  0x37   : > { %s500_s16 = scalar_lea.vmem (!%p2177_p3), [#allocation2], %s2254_s11 }
  0x3a   : > { %2033 = dma.done.wait (%p2227_p11), %s497_s13, 256  }
  0x3b   : > { %2035 = vsyncadd (%p2227_p11), %s497_s13, 4294967040 }
  0x3c   : > { %2037 = dma.done.wait (%p51_p1), [#allocation5], 32  }
  0x3d   : > { %2039 = vsyncadd (%p51_p1), [#allocation5], 4294967264 }
  0x3e   : > { %2041 = dma.done.wait (%p51_p1), [#allocation8], 2176  }
  0x3f   : > { %2043 = vsyncadd (%p51_p1), [#allocation8], 4294965120 }
  0x40   : > { %2045 = dma.done.wait (%p51_p1), [#allocation11], 2048  }
  0x41   : > { %2047 = vsyncadd (%p51_p1), [#allocation11], 4294965248  ;;  %v1670_v0 = vld [vmem:[%s2448_s2 + $0x38] sm:$0xff]  ;;  %v1669_v2 = vld [vmem:[%s2448_s2 + $0x30] sm:$0xff]  ;;  %p574_p1 = scmp.lt.s32.totalorder %s2172_s20, 1  ;;  %vm940_vm0 = vcmask 130048  }
  0x42   : > { %v1678_v1 = vld [vmem:[%s2448_s2 + $0x78] sm:$0xff]  ;;  %720 = vmatpush.bf16.msra.mxu0 %v1670_v0  ;;  %v1677_v3 = vld [vmem:[%s2448_s2 + $0x70] sm:$0xff]  ;;  %v1668_v4 = vld [vmem:[%s2448_s2 + $0x28] sm:$0xff]  ;;  %s2472_s5 = sld [smem:[#allocation19_spill]]  ;;  %vm1251_vm5 = vcmask 64512  }
  0x43   : > { %733 = vmatpush.bf16.msra.mxu1 %v1678_v1  ;;  %v1676_v5 = vld [vmem:[%s2448_s2 + $0x68] sm:$0xff]  ;;  %v1686_v6 = vld [vmem:[%s2450_s4 + $0x38] sm:$0xff]  ;;  %v1685_v8 = vld [vmem:[%s2450_s4 + $0x30] sm:$0xff]  ;;  %s2480_s20 = smov (!%p574_p1, %s2172_s20), 1  ;;  %s2473_s14 = sld [smem:[#allocation18_spill]] }
  0x44   : > { %v1694_v7 = vld [vmem:[%s2452_s6 + $0x38] sm:$0xff]  ;;  %816 = vmatpush.bf16.msra.mxu2 %v1686_v6  ;;  %v1693_v9 = vld [vmem:[%s2452_s6 + $0x30] sm:$0xff]  ;;  %v1667_v10 = vld [vmem:[%s2448_s2 + $0x20] sm:$0xff]  ;;  %s1396_s19 = sshll.u32 %s2480_s20, 3  ;;  %s2474_s22 = sld [smem:[#allocation20_spill]] }
  0x45   : > { %897 = vmatpush.bf16.msra.mxu3 %v1694_v7  ;;  %v1675_v11 = vld [vmem:[%s2448_s2 + $0x60] sm:$0xff]  ;;  %v1684_v12 = vld [vmem:[%s2450_s4 + $0x28] sm:$0xff]  ;;  %v1666_v14 = vld [vmem:[%s2448_s2 + $0x18] sm:$0xff]  ;;  %s577_s26 = scalar_lea.vmem %s2447_s1, %s1396_s19 }
  0x46   : > { %721 = vmatpush.bf16.msra.mxu0 %v1669_v2  ;;  %v1692_v13 = vld [vmem:[%s2452_s6 + $0x28] sm:$0xff]  ;;  %v1674_v15 = vld [vmem:[%s2448_s2 + $0x58] sm:$0xff]  ;;  %v1683_v16 = vld [vmem:[%s2450_s4 + $0x20] sm:$0xff] }
  0x47   : > { %734 = vmatpush.bf16.msra.mxu1 %v1677_v3  ;;  %v1691_v17 = vld [vmem:[%s2452_s6 + $0x20] sm:$0xff]  ;;  %v1665_v18 = vld [vmem:[%s2448_s2 + $0x10] sm:$0xff]  ;;  %v1682_v20 = vld [vmem:[%s2450_s4 + $0x18] sm:$0xff] }
  0x48   : > { %817 = vmatpush.bf16.msra.mxu2 %v1685_v8  ;;  %v1673_v19 = vld [vmem:[%s2448_s2 + $0x50] sm:$0xff]  ;;  %v1690_v21 = vld [vmem:[%s2452_s6 + $0x18] sm:$0xff]  ;;  %v1664_v22 = vld [vmem:[%s2448_s2 + $0x8] sm:$0xff] }
  0x49   : > { %898 = vmatpush.bf16.msra.mxu3 %v1693_v9  ;;  %v1672_v23 = vld [vmem:[%s2448_s2 + $0x48] sm:$0xff]  ;;  %v1681_v24 = vld [vmem:[%s2450_s4 + $0x10] sm:$0xff]  ;;  %v1663_v26 = vld [vmem:[%s2448_s2] sm:$0xff] }
  0x4a   : > { %722 = vmatpush.bf16.msra.mxu0 %v1668_v4  ;;  %v1689_v25 = vld [vmem:[%s2452_s6 + $0x10] sm:$0xff]  ;;  %v1671_v27 = vld [vmem:[%s2448_s2 + $0x40] sm:$0xff]  ;;  %v2363_v29 = vld [vmem:[%s500_s16 + $0x8] sm:$0xff]  ;;  %s581_s24 = scalar_lea.vmem %s2474_s22, %s1396_s19 }
  0x4b   : > { %735 = vmatpush.bf16.msra.mxu1 %v1676_v5  ;;  %v2359_v28 = vld [vmem:[%s500_s16] sm:$0xff]  ;;  %v587_v31 = vpack.c.bf16 %v2363_v29, %v2363_v29  ;;  %v1680_v32 = vld [vmem:[%s2450_s4 + $0x8] sm:$0xff]  ;;  %v1589_v55 = vld [vmem:[#allocation9 + $0x70] sm:$0xf] }
  0x4c   : > { %818 = vmatpush.bf16.msra.mxu2 %v1684_v12  ;;  %v586_v30 = vpack.c.bf16 %v2359_v28, %v2359_v28  ;;  %v1688_v33 = vld [vmem:[%s2452_s6 + $0x8] sm:$0xff]  ;;  %v1679_v34 = vld [vmem:[%s2450_s4] sm:$0xff]  ;;  %v1653_v60 = vld [vmem:[#allocation10 + $0x70] sm:$0xf] }
  0x4d   : > { %899 = vmatpush.bf16.msra.mxu3 %v1692_v13  ;;  %v1687_v35 = vld [vmem:[%s2452_s6] sm:$0xff]  ;;  %v1591_v59 = vld [vmem:[#allocation9 + $0x78] sm:$0xf0]  ;;  %v1581_v3 = vld [vmem:[#allocation9 + $0x60] sm:$0xf] }
  0x4e   : > { %723 = vmatpush.bf16.msra.mxu0 %v1667_v10  ;;  %v1822_v36 = vld [vmem:[%s2449_s3] ss:$0 sm:$0xff]  ;;  %v1695_v45 = vld [vmem:[#allocation7] sm:$0xff]  ;;  %v1824_v46 = vld [vmem:[#allocation6] ss:$0 sm:$0xff] }
  0x4f   : > { %736 = vmatpush.bf16.msra.mxu1 %v1675_v11  ;;  %v1823_v51 = vld [vmem:[#allocation4] ss:$0 sm:$0xff]  ;;  %v1711_v56 = vld [vmem:[#allocation9 + $0x74] sm:$0xf0]  ;;  %v1655_v2 = vld [vmem:[#allocation10 + $0x78] sm:$0xf0] }
  0x50   : > { %819 = vmatpush.bf16.msra.mxu2 %v1683_v16  ;;  %v1710_v57 = vld [vmem:[#allocation9 + $0x74] sm:$0xf]  ;;  %v1590_v58 = vor.u32 %v1711_v56, %v1589_v55  ;;  %v1727_v61 = vld [vmem:[#allocation10 + $0x74] sm:$0xf0]  ;;  %v1709_v6 = vld [vmem:[#allocation9 + $0x64] sm:$0xf0] }
  0x51   : > { %900 = vmatpush.bf16.msra.mxu3 %v1691_v17  ;;  %v1594_v63 = vor.u32 %v1710_v57, %v1591_v59  ;;  %v1654_v0 = vor.u32 %v1727_v61, %v1653_v60  ;;  %v1726_v1 = vld [vmem:[#allocation10 + $0x74] sm:$0xf]  ;;  %v1708_v7 = vld [vmem:[#allocation9 + $0x64] sm:$0xf]  ;;  %v1582_v9 = vor.u32 %v1709_v6, %v1581_v3  ;;  %v1583_v10 = vld [vmem:[#allocation9 + $0x68] sm:$0xf0] }
  0x52   : > { %724 = vmatpush.bf16.msra.mxu0 %v1666_v14  ;;  %v1658_v5 = vor.u32 %v1726_v1, %v1655_v2  ;;  %v1645_v11 = vld [vmem:[#allocation10 + $0x60] sm:$0xf]  ;;  %v1725_v12 = vld [vmem:[#allocation10 + $0x64] sm:$0xf0]  ;;  %v1724_v13 = vld [vmem:[#allocation10 + $0x64] sm:$0xf]  ;;  %v1586_v14 = vor.u32 %v1708_v7, %v1583_v10 }
  0x53   : > { %737 = vmatpush.bf16.msra.mxu1 %v1674_v15  ;;  %v1646_v15 = vor.u32 %v1725_v12, %v1645_v11  ;;  %v1647_v16 = vld [vmem:[#allocation10 + $0x68] sm:$0xf0]  ;;  %v1573_v17 = vld [vmem:[#allocation9 + $0x50] sm:$0xf]  ;;  %v1718_v56 = vld [vmem:[#allocation10 + $0x34] sm:$0xf] }
  0x54   : > { %820 = vmatpush.bf16.msra.mxu2 %v1682_v20  ;;  %v1650_v20 = vor.u32 %v1724_v13, %v1647_v16  ;;  %v1623_v57 = vld [vmem:[#allocation10 + $0x38] sm:$0xf0]  ;;  %v1549_v59 = vld [vmem:[#allocation9 + $0x20] sm:$0xf]  ;;  %v1701_v60 = vld [vmem:[#allocation9 + $0x24] sm:$0xf0] }
  0x55   : > { %901 = vmatpush.bf16.msra.mxu3 %v1690_v21  ;;  %v1551_v1 = vld [vmem:[#allocation9 + $0x28] sm:$0xf0]  ;;  %v1626_v3 = vor.u32 %v1718_v56, %v1623_v57  ;;  %v1717_v6 = vld [vmem:[#allocation10 + $0x24] sm:$0xf0]  ;;  %v1550_v11 = vor.u32 %v1701_v60, %v1549_v59  ;;  %v1103_v59 = vld [vmem:[%s2472_s5] sm:$0x3] }
  0x56   : > { %725 = vmatpush.bf16.msra.mxu0 %v1665_v18  ;;  %v1707_v18 = vld [vmem:[#allocation9 + $0x54] sm:$0xf0]  ;;  %v1615_v10 = vld [vmem:[#allocation10 + $0x28] sm:$0xf0]  ;;  %v1106_v60 = vperm.slane %v1103_v59, 1 }
  0x57   : > { %738 = vmatpush.bf16.msra.mxu1 %v1673_v19  ;;  %v1574_v21 = vor.u32 %v1707_v18, %v1573_v17 }
  0x58   : > { %821 = vmatpush.bf16.msra.mxu2 %v1681_v24  ;;  %v1637_v24 = vld [vmem:[#allocation10 + $0x50] sm:$0xf] }
  0x59   : > { %902 = vmatpush.bf16.msra.mxu3 %v1689_v25 }
  0x5a   : > { %726 = vmatpush.bf16.msra.mxu0 %v1664_v22  ;;  %v1706_v22 = vld [vmem:[#allocation9 + $0x54] sm:$0xf] }
  0x5b   : > { %739 = vmatpush.bf16.msra.mxu1 %v1672_v23  ;;  %v1575_v23 = vld [vmem:[#allocation9 + $0x58] sm:$0xf0] }
  0x5c   : > { %822 = vmatpush.bf16.msra.mxu2 %v1680_v32  ;;  %v1578_v25 = vor.u32 %v1706_v22, %v1575_v23 }
  0x5d   : > { %903 = vmatpush.bf16.msra.mxu3 %v1688_v33  ;;  %v1565_v33 = vld [vmem:[#allocation9 + $0x40] sm:$0xf] }
  0x5e   : > { %727 = vmatpush.bf16.msra.mxu0 %v1663_v26  ;;  %v1723_v26 = vld [vmem:[#allocation10 + $0x54] sm:$0xf0] }
  0x5f   : > { %740 = vmatpush.bf16.msra.mxu1 %v1671_v27  ;;  %v1722_v27 = vld [vmem:[#allocation10 + $0x54] sm:$0xf] }
  0x60   : > { %823 = vmatpush.bf16.msra.mxu2 %v1679_v34  ;;  %v1705_v34 = vld [vmem:[#allocation9 + $0x44] sm:$0xf0] }
  0x61   : > { %728 = vmatmul.bf16.vlgmr.msra.gmra.mxu0 %v586_v30  ;;  %904 = vmatpush.bf16.msra.mxu3 %v1687_v35  ;;  %v1639_v30 = vld [vmem:[#allocation10 + $0x58] sm:$0xf0]  ;;  %v1704_v35 = vld [vmem:[#allocation9 + $0x44] sm:$0xf] }
  0x62   : > { %741 = vmatmul.bf16.vlgmr.msra.gmra.mxu1 %v587_v31  ;;  %951 = vmatpush.bf16.msrb.mxu0 %v1695_v45  ;;  %v1638_v31 = vor.u32 %v1723_v26, %v1637_v24  ;;  %v1642_v32 = vor.u32 %v1722_v27, %v1639_v30  ;;  %v1541_v30 = vld [vmem:[#allocation9 + $0x10] sm:$0xf] }
  0x63   : > { %1061 = vmatpush.bf16.msrb.mxu1 %v1590_v58 }
  0x64   : > { %1074 = vmatpush.bf16.msrb.mxu2 %v1594_v63 }
  0x65   : > { %1189 = vmatpush.bf16.msrb.mxu3 %v1654_v0  ;;  %v1700_v0 = vld [vmem:[#allocation9 + $0x24] sm:$0xf] }
  0x66   : > { %1202 = vmatpush.bf16.msra.mxu0 %v1658_v5  ;;  %v1613_v5 = vld [vmem:[#allocation10 + $0x20] sm:$0xf] }
  0x67   : > { %1062 = vmatpush.bf16.msrb.mxu1 %v1582_v9  ;;  %v1716_v9 = vld [vmem:[#allocation10 + $0x24] sm:$0xf]  ;;  %v1614_v16 = vor.u32 %v1717_v6, %v1613_v5 }
  0x68   : > { %1075 = vmatpush.bf16.msrb.mxu2 %v1586_v14  ;;  %v1618_v17 = vor.u32 %v1716_v9, %v1615_v10 }
  0x69   : > { %1190 = vmatpush.bf16.msrb.mxu3 %v1646_v15  ;;  %v1554_v15 = vor.u32 %v1700_v0, %v1551_v1 }
  0x6a   : > { %1203 = vmatpush.bf16.msra.mxu0 %v1650_v20  ;;  %v585_v20 = vld [vmem:[%s577_s26] sm:$0xff] }
  0x6b   : > { %1063 = vmatpush.bf16.msrb.mxu1 %v1574_v21 }
  0x6c   : > { %1076 = vmatpush.bf16.msrb.mxu2 %v1578_v25 }
  0x6d   : > { %1191 = vmatpush.bf16.msrb.mxu3 %v1638_v31  ;;  %v1699_v31 = vld [vmem:[#allocation9 + $0x14] sm:$0xf0] }
  0x6e   : > { %1204 = vmatpush.bf16.msra.mxu0 %v1642_v32  ;;  %v1698_v32 = vld [vmem:[#allocation9 + $0x14] sm:$0xf] }
  0xde   : > { %v729_v37 = vpop.f32.mrf.mxu0 }
  0xdf   : > { %v742_v38 = vpop.f32.mrf.mxu1  ;;  %v730_v39 = vadd.f32 %v1822_v36, %v729_v37  ;;  %v1567_v36 = vld [vmem:[#allocation9 + $0x48] sm:$0xf0]  ;;  %v1629_v37 = vld [vmem:[#allocation10 + $0x40] sm:$0xf] }
  0xe1   : > { %v743_v40 = vadd.f32 %v742_v38, %v730_v39  ;;  %v1721_v38 = vld [vmem:[#allocation10 + $0x44] sm:$0xf0] }
  0xe2   : > { %v1630_v45 = vor.u32 %v1721_v38, %v1629_v37 }
  0xe3   : > { %v746_v41 = vmax.f32 %v743_v40, 0.0  ;;  %v1566_v40 = vor.u32 %v1705_v34, %v1565_v33  ;;  %v1542_v33 = vor.u32 %v1699_v31, %v1541_v30  ;;  %v1543_v34 = vld [vmem:[#allocation9 + $0x18] sm:$0xf0] }
  0xe4   : > { %1192 = vmatpush.bf16.msrb.mxu3 %v1630_v45  ;;  %v1546_v37 = vor.u32 %v1698_v32, %v1543_v34  ;;  %v1597_v45 = vld [vmem:[#allocation10] sm:$0xf] }
  0xe5   : > { %v747_v42 = vpack.c.bf16 %v746_v41, %v746_v41  ;;  %v1720_v41 = vld [vmem:[#allocation10 + $0x44] sm:$0xf]  ;;  %1064 = vmatpush.bf16.msrb.mxu1 %v1566_v40 }
  0xe6   : > { %v731_v43 = vpop.f32.mrf.mxu0 }
  0xe7   : > { %v744_v44 = vpop.f32.mrf.mxu1  ;;  %824 = vmatmul.bf16.vlgmr.msra.gmra.mxu2 %v747_v42  ;;  %905 = vmatmul.bf16.vlgmr.msra.gmra.mxu3 %v747_v42  ;;  %v1631_v42 = vld [vmem:[#allocation10 + $0x48] sm:$0xf0] }
  0xe8   : > { %v1570_v44 = vor.u32 %v1704_v35, %v1567_v36  ;;  %v1605_v35 = vld [vmem:[#allocation10 + $0x10] sm:$0xf]  ;;  %v1715_v36 = vld [vmem:[#allocation10 + $0x14] sm:$0xf0] }
  0xe9   : > { %v1606_v38 = vor.u32 %v1715_v36, %v1605_v35 }
  0xea   : > { %1077 = vmatpush.bf16.msrb.mxu2 %v1570_v44  ;;  %v1535_v44 = vld [vmem:[#allocation9 + $0x8] sm:$0xf0] }
 0x16a   : > { %v825_v47 = vpop.f32.mrf.mxu2  ;;  %v906_v48 = vpop.f32.mrf.mxu3 }
 0x16b   : > { %v907_v49 = vadd.f32 %v1824_v46, %v906_v48  ;;  %v2384_v54 = vadd.f32 %v1823_v51, %v825_v47  ;;  %v1557_v46 = vld [vmem:[#allocation9 + $0x30] sm:$0xf]  ;;  %v1703_v47 = vld [vmem:[#allocation9 + $0x34] sm:$0xf0]  ;;  %v1702_v48 = vld [vmem:[#allocation9 + $0x34] sm:$0xf] }
 0x16c   : > { %v1621_v51 = vld [vmem:[#allocation10 + $0x30] sm:$0xf]  ;;  %v1558_v58 = vor.u32 %v1703_v47, %v1557_v46  ;;  %v1713_v46 = vld [vmem:[#allocation10 + $0x4] sm:$0xf0] }
 0x16d   : > { %v910_v50 = vmul.f32 1.442695, %v907_v49  ;;  %v1215_v8 = vmul.f32 %v2384_v54, %v2384_v54  ;;  %v1634_v49 = vor.u32 %v1720_v41, %v1631_v42  ;;  %v1533_v41 = vld [vmem:[#allocation9] sm:$0xf]  ;;  %v1696_v42 = vld [vmem:[#allocation9 + $0x4] sm:$0xf] }
 0x16e   : > { %1065 = vmatpush.bf16.msrb.mxu1 %v1558_v58  ;;  %v1538_v47 = vor.u32 %v1696_v42, %v1535_v44 }
 0x16f   : > { %1826 = vpow2.f32 %v910_v50  ;;  %v1559_v50 = vld [vmem:[#allocation9 + $0x38] sm:$0xf0]  ;;  %1205 = vmatpush.bf16.msra.mxu0 %v1634_v49  ;;  %v1712_v49 = vld [vmem:[#allocation10 + $0x4] sm:$0xf] }
 0x172   : > { %v827_v52 = vpop.f32.mrf.mxu2  ;;  %v908_v53 = vpop.f32.mrf.mxu3  ;;  %1066 = vmatpush.bf16.msrb.mxu1 %v1550_v11 }
 0x173   : > { %v1719_v52 = vld [vmem:[#allocation10 + $0x34] sm:$0xf0]  ;;  %1206 = vmatpush.bf16.msra.mxu0 %v1626_v3  ;;  %v1105_v3 = vperm.slane %v1103_v59, 0 }
 0x174   : > { %v1622_v63 = vor.u32 %v1719_v52, %v1621_v51  ;;  %v1825_v52 = vld [vmem:[%s2455_s9] ss:$0 sm:$0xff] }
 0x175   : > { %v1827_v62 = vpop.eup %1826 }
 0x176   : > { %v2386_v4 = vadd.f32 0.0001, %v1827_v62  ;;  %v1562_v62 = vor.u32 %v1702_v48, %v1559_v50  ;;  %1193 = vmatpush.bf16.msrb.mxu3 %v1622_v63  ;;  %1067 = vmatpush.bf16.msrb.mxu1 %v1542_v33  ;;  %v1598_v48 = vor.u32 %v1713_v46, %v1597_v45  ;;  %v1599_v50 = vld [vmem:[#allocation10 + $0x8] sm:$0xf0]  ;;  %v975_v63 = vld [vmem:[%s2473_s14] sm:$0x3] }
 0x177   : > { %1207 = vmatpush.bf16.msra.mxu0 %v1618_v17  ;;  %v1602_v51 = vor.u32 %v1712_v49, %v1599_v50  ;;  %v978_v1 = vperm.slane %v975_v63, 1 }
 0x178   : > { %1828 = vrsqrt.f32 %v2386_v4  ;;  %v1216_v19 = vadd.f32 %v1215_v8, %v2386_v4  ;;  %1078 = vmatpush.bf16.msrb.mxu2 %v1562_v62  ;;  %vm920_vm1 = vcmp.eq.f32.partialorder %v2386_v4, inf  ;;  %v923_v21 = vand.u32 2147483648, %v2386_v4 }
 0x179   : > { %1830 = vlog2.f32 %v2386_v4  ;;  %vm922_vm2 = vcmp.eq.f32.partialorder %v2386_v4, 0.0 }
 0x17a   : > { %v1659_v2 = vadd.f32 -1.0, %v1216_v19  ;;  %1194 = vmatpush.bf16.msrb.mxu3 %v1614_v16 }
 0x17c   : > { %v1218_v12 = vmul.f32 0.5, %v1659_v2  ;;  %1079 = vmatpush.bf16.msrb.mxu2 %v1554_v15 }
 0x17e   : > { %v1829_v39 = vpop.eup %1828  ;;  %1195 = vmatpush.bf16.msrb.mxu3 %v1606_v38 }
 0x17f   : > { %v914_v43 = vmul.f32 %v1829_v39, %v2386_v4  ;;  %v1831_v53 = vpop.eup %1830 }
 0x180   : > { %v1220_v7 = vmul.f32 0.6931472, %v1831_v53  ;;  %1080 = vmatpush.bf16.msrb.mxu2 %v1546_v37 }
 0x181   : > { %v915_v55 = vmul.f32 %v1829_v39, %v914_v43 }
 0x182   : > { %v1221_v13 = vmul.f32 0.5, %v1220_v7  ;;  %1196 = vmatpush.bf16.msrb.mxu3 %v1598_v48  ;;  %v977_v7 = vperm.slane %v975_v63, 0 }
 0x183   : > { %v916_v61 = vmul.f32 0.5, %v915_v55 }
 0x184   : > { %v1222_v18 = vsub.f32 %v1218_v12, %v1221_v13  ;;  %1081 = vmatpush.bf16.msrb.mxu2 %v1538_v47 }
 0x185   : > { %v917_v8 = vsub.f32 1.5, %v916_v61 }
 0x186   : > { %v2410_v22 = vsel %vm940_vm0, %v1222_v18, 0.0 }
 0x187   : > { %v918_v14 = vmul.f32 %v1829_v39, %v917_v8  ;;  %v1607_v39 = vld [vmem:[#allocation10 + $0x18] sm:$0xf0] }
 0x189   : > { %v919_v19 = vmul.f32 %v918_v14, %v2386_v4 }
 0x18b   : > { %v921_v23 = vsel %vm920_vm1, %v2386_v4, %v919_v19  ;;  %v1714_v4 = vld [vmem:[#allocation10 + $0x14] sm:$0xf] }
 0x18c   : > { %v924_v24 = vsel %vm922_vm2, %v923_v21, %v921_v23  ;;  %v1610_v40 = vor.u32 %v1714_v4, %v1607_v39 }
 0x18d   : > { %v925_v25 = vmul.f32 %v924_v24, %v585_v20 }
 0x18e   : > { %1208 = vmatpush.bf16.msra.mxu0 %v1610_v40 }
 0x18f   : > { %v926_v26 = vadd.f32 %v925_v25, %v2384_v54  ;;  %v1697_v54 = vld [vmem:[#allocation9 + $0x4] sm:$0xf0] }
 0x190   : > { %v1534_v43 = vor.u32 %v1697_v54, %v1533_v41 }
 0x191   : > { %v927_v27 = vpack.c.bf16 %v926_v26, %v926_v26 }
 0x192   : > { %1068 = vmatpush.bf16.msrb.mxu1 %v1534_v43  ;;  %1209 = vmatpush.bf16.msra.mxu0 %v1602_v51 }
 0x193   : > { %1530 = vmatmul.msk.bf16.vlgmr.msrb.gmra.mxu0 %vm940_vm0, %v927_v27 }
 0x210   : > { %v953_v53 = vpop.f32.mrf.mxu0 }
 0x211   : > { %v954_v55 = vadd.f32 %v1825_v52, %v953_v53 }
 0x213   : > { %v957_v56 = vmax.f32 %v954_v55, 0.0 }
 0x215   : > { %v958_v57 = vpack.c.bf16 %v957_v56, %v957_v56 }
 0x217   : > { %1069 = vmatmul.bf16.vlgmr.msrb.gmra.mxu1 %v958_v57  ;;  %1082 = vmatmul.bf16.vlgmr.msrb.gmra.mxu2 %v958_v57 }
 0x218   : > { %1197 = vmatmul.bf16.vlgmr.msrb.gmra.mxu3 %v958_v57  ;;  %1210 = vmatmul.bf16.vlgmr.msra.gmra.mxu0 %v958_v57  ;;  %v955_v58 = vpop.f32.mrf.mxu0 }
 0x294   : > { %v1070_v61 = vpop.f32.mrf.mxu1 }
 0x295   : > { %v1211_v62 = vpop.f32.mrf.mxu0  ;;  %v1071_v14 = vadd.f32 %v1070_v61, %v977_v7 }
 0x296   : > { %v1212_v0 = vadd.f32 %v1211_v62, %v1106_v60 }
 0x297   : > { %v1226_v18 = vsub.f32 %v2359_v28, %v1071_v14 }
 0x298   : > { %v1231_v2 = vsub.f32 0.0, %v1212_v0 }
 0x299   : > { %v1228_v23 = vmul.f32 %v1226_v18, %v1226_v18 }
 0x29a   : > { %v1234_v5 = vmul.f32 1.442695, %v1231_v2  ;;  %v1083_v6 = vpop.f32.mrf.mxu2 }
 0x29b   : > { %v1084_v8 = vadd.f32 %v1083_v6, %v978_v1  ;;  %v1198_v9 = vpop.f32.mrf.mxu3 }
 0x29c   : > { %v1199_v10 = vadd.f32 %v1198_v9, %v1105_v3  ;;  %v1072_v11 = vpop.f32.mrf.mxu1  ;;  %1832 = vpow2.f32 %v1234_v5 }
 0x29d   : > { %v1213_v12 = vpop.f32.mrf.mxu0  ;;  %v1227_v15 = vsub.f32 %v2363_v29, %v1084_v8  ;;  %v1245_v29 = vlaneseq }
 0x29e   : > { %v1230_v13 = vsub.f32 0.0, %v1199_v10 }
 0x29f   : > { %v1229_v19 = vmul.f32 %v1227_v15, %v1227_v15  ;;  %v1246_v33 = vand.u32 127, %v1245_v29 }
 0x2a0   : > { %v1232_v16 = vmul.f32 1.442695, %v1230_v13 }
 0x2a1   : > { %vm1248_vm3 = vcmp.eq.s32.totalorder %v1246_v33, 1  ;;  %vm1247_vm4 = vcmp.eq.s32.totalorder %v1246_v33, 0 }
 0x2a2   : > { %1834 = vpow2.f32 %v1232_v16  ;;  %v1085_v17 = vpop.f32.mrf.mxu2  ;;  %v1833_v21 = vpop.eup %1832 }
 0x2a3   : > { %v1200_v20 = vpop.f32.mrf.mxu3  ;;  %v1237_v24 = vmul.f32 %v1833_v21, %v1229_v19 }
 0x2a5   : > { %v1239_v30 = vadd.f32 %v1237_v24, %v1212_v0 }
 0x2a8   : > { %v1835_v25 = vpop.eup %1834 }
 0x2a9   : > { %v1236_v26 = vmul.f32 %v1835_v25, %v1228_v23 }
 0x2ab   : > { %v1238_v27 = vadd.f32 %v1236_v26, %v1199_v10 }
 0x2ad   : > { %v1240_v31 = vadd.f32 %v1239_v30, %v1238_v27 }
 0x2af   : > { %1241 = vadd.xlane.f32.xlu0 %v1240_v31 }
 0x2b7   : > { %1224 = vadd.xlane.f32.xlu0 %v2410_v22 }
 0x322   : > { %v1242_v32 = vpop.xlane.xlu0 %1241 }
 0x323   : > { %v1243_v34 = vmul.f32 0.5, %v1242_v32 }
 0x325   : > { %v1244_v28 = vadd.f32 235.24826, %v1243_v34 }
 0x32a   : > { %v1225_v35 = vpop.xlane.xlu0 %1224 }
 0x32b   : > { %v1249_v36 = vsel %vm1248_vm3, %v1225_v35, 0.0 }
 0x32c   : > { %v1250_v37 = vsel %vm1247_vm4, %v1244_v28, %v1249_v36 }
 0x32d   : > { %1252 = vst.msk [vmem:[%s581_s24] sm:$0xff] %vm1251_vm5, %v1250_v37 }
 0x32e PF: > { %p27_p3 = scmp.ge.s32.totalorder %s2212_s18, 4   ;;  %s2475_s29 = smov %s2054_s30 }
 0x32f   : > { %s2476_s30 = smov %s2058_s15  ;;  %s2477_s15 = smov %s2223_s25 }
 0x330   : > { %s2478_s16 = smov %s2212_s18  ;;  %29 = sbr.rel (!%p27_p3) target bundleno = 12 (0xc), region = 139 }
 0x335   :  { %1272 = vsyncpa [#allocation3], 1 }
 0x336   :  { %1274 = vsyncpa [#allocation3 + $0x1], 1 }
 0x337   :  { %1275 = vsyncpa [#allocation5], 1 }
 0x338   :  { %1276 = vsyncpa [#allocation8], 1 }
 0x339   :  { %1277 = vsyncpa [#allocation11], 1 }

// kernel: tpu_custom_call.1
= control target key start
LH: loop header
LB: loop body
LE: loop exit
PB: predicated region body
PF: predicated region fallthrough
CT: control target
= control target key end

     0   :  { %s2446_s0 = inlined_call_operand.hbm [shape: f32[16,256], index: 0, kind: input, shape index: {}]   ;;  %s2447_s1 = inlined_call_operand.vmem [shape: f32[16,16], index: 1, kind: input, shape index: {}]   ;;  %s2448_s2 = inlined_call_operand.vmem [shape: bf16[256,128], index: 2, kind: input, shape index: {}]   ;;  %s2449_s3 = inlined_call_operand.vmem [shape: f32[1,128], index: 3, kind: input, shape index: {}]   ;;  %s2450_s4 = inlined_call_operand.vmem [shape: bf16[128,16], index: 4, kind: input, shape index: {}]   ;;  %s2451_s5 = inlined_call_operand.hbm [shape: f32[1,16], index: 5, kind: input, shape index: {}]   ;;  %s2452_s6 = inlined_call_operand.vmem [shape: bf16[128,16], index: 6, kind: input, shape index: {}]   ;;  %s2453_s7 = inlined_call_operand.hbm [shape: f32[1,16], index: 7, kind: input, shape index: {}]   ;;  %s2454_s8 = inlined_call_operand.hbm [shape: bf16[16,128], index: 8, kind: input, shape index: {}]   ;;  %s2455_s9 = inlined_call_operand.vmem [shape: f32[1,128], index: 9, kind: input, shape index: {}]   ;;  %s2456_s10 = inlined_call_operand.hbm [shape: bf16[128,256], index: 10, kind: input, shape index: {}]   ;;  %s2457_s11 = inlined_call_operand.vmem [shape: f32[1,256], index: 11, kind: input, shape index: {}]   ;;  %s2458_s12 = inlined_call_operand.hbm [shape: bf16[128,256], index: 12, kind: input, shape index: {}]   ;;  %s2459_s13 = inlined_call_operand.vmem [shape: f32[1,256], index: 13, kind: input, shape index: {}]   ;;  %s2460_s14 = inlined_call_operand.vmem [shape: f32[16,8], index: 14, kind: output, shape index: {}]  }
   0x1   :  { %2461 = sst [smem:[#allocation16_spill]] %s2451_s5 }
   0x2   :  { %2462 = sst [smem:[#allocation17_spill]] %s2454_s8 }
   0x3   :  { %2463 = sst [smem:[#allocation18_spill]] %s2457_s11 }
   0x4   :  { %2464 = sst [smem:[#allocation19_spill]] %s2459_s13 }
   0x5   :  { %2465 = sst [smem:[#allocation20_spill]] %s2460_s14 }
   0x6   :  { %19 = vsyncpa [#allocation3], 0 }
   0x7   :  { %21 = vsyncpa [#allocation3 + $0x1], 0 }
   0x8   :  { %22 = vsyncpa [#allocation5], 0 }
   0x9   :  { %23 = vsyncpa [#allocation8], 0 }
   0xa   :  { %24 = vsyncpa [#allocation11], 0  ;;  %s2148_s29 = smov 0   ;;  %s2150_s30 = smov 0  }
   0xb   :  { %s2152_s15 = smov 0   ;;  %s2154_s16 = smov 0  }
   0xc LB: > { %s2466_s5 = sld [smem:[#allocation16_spill]]  ;;  %s2172_s20 = sadd.s32 4294967295, %s2062_s16   ;;  %s2062_s16 = sphi %s2154_s16, %s2478_s16   ;;  %s2058_s15 = sphi %s2152_s15, %s2477_s15   ;;  %s2054_s30 = sphi %s2150_s30, %s2476_s30   ;;  %s2050_s29 = sphi %s2148_s29, %s2475_s29  }
   0xd   : > { %p1379_p0 = scmp.ge.s32.totalorder %s2062_s16, 1  ;;  %p51_p1 = scmp.eq.s32.totalorder %s2172_s20, 0 }
   0xe   : > { %p365_p2 = scmp.lt.s32.totalorder %s2062_s16, 3  ;;  %s2064_s22 = smov [#allocation4]  }
   0xf   : > { %s388_s23 = sshll.u32 %s2064_s22, 4  ;;  %s2468_s8 = sld [smem:[#allocation17_spill]]  ;;  %s389_s23 = int_to_ptr.vmem [resolvable:$true] %s388_s23 }
  0x10   : > { %p2177_p3 = pnand %p1379_p0, %p365_p2  ;;  %s2065_s28 = smov [#allocation7]  }
  0x11   : > { %s414_s17 = sshll.u32 %s2065_s28, 4  ;;  %s2066_s18 = smov 64   ;;  %s415_s17 = int_to_ptr.vmem [resolvable:$true] %s414_s17 }
  0x12   : > { %s386_s19 = sshll.u32 %s2466_s5, 4  ;;  %p1750_p4 = pneg %p2177_p3  ;;  %s387_s19 = int_to_ptr.hbm [resolvable:$true] %s386_s19 }
  0x13   : > { %s2067_s22 = smov 4   ;;  %s401_s5 = sshll.u32 %s2453_s7, 4  ;;  %s402_s5 = int_to_ptr.hbm [resolvable:$true] %s401_s5 }
  0x14   : > { %p2188_p5 = pnand %p1750_p4, %p51_p1  ;;  %s429_s28 = sshll.u32 %s2456_s10, 4  ;;  %s430_s28 = int_to_ptr.hbm [resolvable:$true] %s429_s28 }
  0x15   : > { %s412_s26 = sshll.u32 %s2468_s8, 4  ;;  %s2068_s8 = smov [#allocation6]   ;;  %s413_s26 = int_to_ptr.hbm [resolvable:$true] %s412_s26 }
  0x16   : > { %1753 = dma.hbm_to_vmem [thread:$0]  (!%p2188_p5), %s387_s19, 16, %s389_s23, [#allocation5]  }
  0x17   : > { %1759 = dma.hbm_to_vmem [thread:$0]  (!%p2188_p5), %s413_s26, 128, %s415_s17, [#allocation8], %s2066_s18, %s2066_s18, %s2067_s22  }
  0x18   : > { %s403_s14 = sshll.u32 %s2068_s8, 4  ;;  %s2069_s19 = smov [#allocation9]   ;;  %s404_s14 = int_to_ptr.vmem [resolvable:$true] %s403_s14 }
  0x19   : > { %1756 = dma.hbm_to_vmem [thread:$0]  (!%p2188_p5), %s402_s5, 16, %s404_s14, [#allocation5]  }
  0x1a   : > { %s431_s23 = sshll.u32 %s2069_s19, 4  ;;  %s2070_s8 = smov 128   ;;  %s432_s23 = int_to_ptr.vmem [resolvable:$true] %s431_s23 }
  0x1b   : > { %s2071_s26 = smov 8   ;;  %s446_s5 = sshll.u32 %s2458_s12, 4  ;;  %s447_s5 = int_to_ptr.hbm [resolvable:$true] %s446_s5 }
  0x1c   : > { %1762 = dma.hbm_to_vmem [thread:$0]  (!%p2188_p5), %s430_s28, 2048, %s432_s23, [#allocation8], %s2070_s8, %s2070_s8, %s2071_s26  }
  0x1d   : > { %s2072_s14 = smov [#allocation10]   ;;  %s2212_s18 = sadd.s32 1, %s2062_s16  }
  0x1e   : > { %s448_s17 = sshll.u32 %s2072_s14, 4  ;;  %s34_s22 = ssub.s32 %s2062_s16, %s2212_s18  ;;  %s449_s17 = int_to_ptr.vmem [resolvable:$true] %s448_s17 }
  0x1f   : > { %1765 = dma.hbm_to_vmem [thread:$0]  (!%p2188_p5), %s447_s5, 2048, %s449_s17, [#allocation11], %s2070_s8, %s2070_s8, %s2071_s26  }
  0x20   : > { %s37_s24 = sadd.s32 1, %s2058_s15  ;;  %p35_p6 = scmp.eq.s32.totalorder %s34_s22, 0 }
  0x21   : > { %p44_p7 = scmp.ne.s32.totalorder %s2058_s15, %s2054_s30  ;;  %p45_p8 = scmp.eq.s32.totalorder %s2062_s16, 0 }
  0x22   : > { %p50_p9 = scmp.ne.s32.totalorder %s2054_s30, %s2050_s29  ;;  %p1775_p12 = scmp.lt.s32.totalorder %s2062_s16, 2 }
  0x23   : > { %s2223_s25 = scalar_select %p35_p6, %s2058_s15, %s37_s24  }
  0x24   : > { %p46_p10 = por %p45_p8, %p44_p7  ;;  %p2227_p11 = por %p51_p1, %p50_p9 }
  0x25   : > { %s465_s27 = sand.u32 1, %s2058_s15   ;;  %s1662_s23 = sshll.u32 %s2062_s16, 4 }
  0x26   : > { %s1386_s19 = sshll.u32 %s465_s27, 4  ;;  %s474_s11 = scalar_lea.hbm %s2446_s0, %s1662_s23 }
  0x27   : > { %s469_s13 = scalar_lea.vmem [#allocation2], %s1386_s19  ;;  %s476_s14 = sshll.u32 %s474_s11, 4  ;;  %s477_s14 = int_to_ptr.hbm [resolvable:$true] %s476_s14 }
  0x28   : > { %s478_s5 = sshll.u32 %s469_s13, 4  ;;  %p2237_p13 = pnand %p1775_p12, %p46_p10  ;;  %s479_s5 = int_to_ptr.vmem [resolvable:$true] %s478_s5 }
  0x29   : > { %s466_s17 = scalar_lea.sflag [#allocation3], %s465_s27  ;;  %s1986_s22 = sshra.s32 %s477_s14, 4  ;;  %s1987_s22 = int_to_ptr.hbm [resolvable:$true] %s1986_s22 }
  0x2a   : > { %s1988_s24 = scalar_lea.hbm %s1987_s22, 16  ;;  %p1990_p2 = pneg %p2237_p13 }
  0x2b   : > { %p1989_p0 = scmp.ne.s32.totalorder %s1987_s22, %s1988_s24  ;;  %s1993_s23 = scalar_lea.hbm %s2446_s0, 32 }
  0x2c   : > { %p1994_p6 = scmp.lt.s32.totalorder %s1987_s22, %s2446_s0  ;;  %p1995_p7 = scmp.lt.s32.totalorder %s1993_s23, %s1988_s24 }
  0x2d   : > { %p1991_p4 = pnand %p1990_p2, %p1989_p0 }
  0x2e   : > { %p1996_p8 = por %p1995_p7, %p1994_p6 }
  0x2f   : > { %p1992_p5 = pneg %p1991_p4 }
  0x31   : > { %p1997_p9 = pnand %p1996_p8, %p1992_p5 }
  0x33   : > { %2000 = shalt.err (!%p1997_p9)
}
  0x34   : > { %1769 = dma.hbm_to_vmem [thread:$0]  (!%p2237_p13), %s477_s14, 256, %s479_s5, %s466_s17  }
  0x35   : > { %494 = sbr.rel (%p2177_p3) target bundleno = 814 (0x32e), region = 76  ;;  %s496_s27 = sand.u32 (!%p2177_p3), 1, %s2054_s30  }
  0x36   : > { %s2254_s11 = sshll.u32 (!%p2177_p3), %s496_s27, 4  ;;  %s497_s13 = scalar_lea.sflag (!%p2177_p3), [#allocation3], %s496_s27 }
  0x37   : > { %s500_s16 = scalar_lea.vmem (!%p2177_p3), [#allocation2], %s2254_s11 }
  0x3a   : > { %2033 = dma.done.wait (%p2227_p11), %s497_s13, 256  }
  0x3b   : > { %2035 = vsyncadd (%p2227_p11), %s497_s13, 4294967040 }
  0x3c   : > { %2037 = dma.done.wait (%p51_p1), [#allocation5], 32  }
  0x3d   : > { %2039 = vsyncadd (%p51_p1), [#allocation5], 4294967264 }
  0x3e   : > { %2041 = dma.done.wait (%p51_p1), [#allocation8], 2176  }
  0x3f   : > { %2043 = vsyncadd (%p51_p1), [#allocation8], 4294965120 }
  0x40   : > { %2045 = dma.done.wait (%p51_p1), [#allocation11], 2048  }
  0x41   : > { %2047 = vsyncadd (%p51_p1), [#allocation11], 4294965248  ;;  %v1670_v0 = vld [vmem:[%s2448_s2 + $0x38] sm:$0xff]  ;;  %v1669_v2 = vld [vmem:[%s2448_s2 + $0x30] sm:$0xff]  ;;  %p574_p1 = scmp.lt.s32.totalorder %s2172_s20, 1  ;;  %vm940_vm0 = vcmask 130048  }
  0x42   : > { %v1678_v1 = vld [vmem:[%s2448_s2 + $0x78] sm:$0xff]  ;;  %720 = vmatpush.bf16.msra.mxu0 %v1670_v0  ;;  %v1677_v3 = vld [vmem:[%s2448_s2 + $0x70] sm:$0xff]  ;;  %v1668_v4 = vld [vmem:[%s2448_s2 + $0x28] sm:$0xff]  ;;  %s2472_s5 = sld [smem:[#allocation19_spill]]  ;;  %vm1251_vm5 = vcmask 64512  }
  0x43   : > { %733 = vmatpush.bf16.msra.mxu1 %v1678_v1  ;;  %v1676_v5 = vld [vmem:[%s2448_s2 + $0x68] sm:$0xff]  ;;  %v1686_v6 = vld [vmem:[%s2450_s4 + $0x38] sm:$0xff]  ;;  %v1685_v8 = vld [vmem:[%s2450_s4 + $0x30] sm:$0xff]  ;;  %s2480_s20 = smov (!%p574_p1, %s2172_s20), 1  ;;  %s2473_s14 = sld [smem:[#allocation18_spill]] }
  0x44   : > { %v1694_v7 = vld [vmem:[%s2452_s6 + $0x38] sm:$0xff]  ;;  %816 = vmatpush.bf16.msra.mxu2 %v1686_v6  ;;  %v1693_v9 = vld [vmem:[%s2452_s6 + $0x30] sm:$0xff]  ;;  %v1667_v10 = vld [vmem:[%s2448_s2 + $0x20] sm:$0xff]  ;;  %s1396_s19 = sshll.u32 %s2480_s20, 3  ;;  %s2474_s22 = sld [smem:[#allocation20_spill]] }
  0x45   : > { %897 = vmatpush.bf16.msra.mxu3 %v1694_v7  ;;  %v1675_v11 = vld [vmem:[%s2448_s2 + $0x60] sm:$0xff]  ;;  %v1684_v12 = vld [vmem:[%s2450_s4 + $0x28] sm:$0xff]  ;;  %v1666_v14 = vld [vmem:[%s2448_s2 + $0x18] sm:$0xff]  ;;  %s577_s26 = scalar_lea.vmem %s2447_s1, %s1396_s19 }
  0x46   : > { %721 = vmatpush.bf16.msra.mxu0 %v1669_v2  ;;  %v1692_v13 = vld [vmem:[%s2452_s6 + $0x28] sm:$0xff]  ;;  %v1674_v15 = vld [vmem:[%s2448_s2 + $0x58] sm:$0xff]  ;;  %v1683_v16 = vld [vmem:[%s2450_s4 + $0x20] sm:$0xff] }
  0x47   : > { %734 = vmatpush.bf16.msra.mxu1 %v1677_v3  ;;  %v1691_v17 = vld [vmem:[%s2452_s6 + $0x20] sm:$0xff]  ;;  %v1665_v18 = vld [vmem:[%s2448_s2 + $0x10] sm:$0xff]  ;;  %v1682_v20 = vld [vmem:[%s2450_s4 + $0x18] sm:$0xff] }
  0x48   : > { %817 = vmatpush.bf16.msra.mxu2 %v1685_v8  ;;  %v1673_v19 = vld [vmem:[%s2448_s2 + $0x50] sm:$0xff]  ;;  %v1690_v21 = vld [vmem:[%s2452_s6 + $0x18] sm:$0xff]  ;;  %v1664_v22 = vld [vmem:[%s2448_s2 + $0x8] sm:$0xff] }
  0x49   : > { %898 = vmatpush.bf16.msra.mxu3 %v1693_v9  ;;  %v1672_v23 = vld [vmem:[%s2448_s2 + $0x48] sm:$0xff]  ;;  %v1681_v24 = vld [vmem:[%s2450_s4 + $0x10] sm:$0xff]  ;;  %v1663_v26 = vld [vmem:[%s2448_s2] sm:$0xff] }
  0x4a   : > { %722 = vmatpush.bf16.msra.mxu0 %v1668_v4  ;;  %v1689_v25 = vld [vmem:[%s2452_s6 + $0x10] sm:$0xff]  ;;  %v1671_v27 = vld [vmem:[%s2448_s2 + $0x40] sm:$0xff]  ;;  %v2363_v29 = vld [vmem:[%s500_s16 + $0x8] sm:$0xff]  ;;  %s581_s24 = scalar_lea.vmem %s2474_s22, %s1396_s19 }
  0x4b   : > { %735 = vmatpush.bf16.msra.mxu1 %v1676_v5  ;;  %v2359_v28 = vld [vmem:[%s500_s16] sm:$0xff]  ;;  %v587_v31 = vpack.c.bf16 %v2363_v29, %v2363_v29  ;;  %v1680_v32 = vld [vmem:[%s2450_s4 + $0x8] sm:$0xff]  ;;  %v1589_v55 = vld [vmem:[#allocation9 + $0x70] sm:$0xf] }
  0x4c   : > { %818 = vmatpush.bf16.msra.mxu2 %v1684_v12  ;;  %v586_v30 = vpack.c.bf16 %v2359_v28, %v2359_v28  ;;  %v1688_v33 = vld [vmem:[%s2452_s6 + $0x8] sm:$0xff]  ;;  %v1679_v34 = vld [vmem:[%s2450_s4] sm:$0xff]  ;;  %v1653_v60 = vld [vmem:[#allocation10 + $0x70] sm:$0xf] }
  0x4d   : > { %899 = vmatpush.bf16.msra.mxu3 %v1692_v13  ;;  %v1687_v35 = vld [vmem:[%s2452_s6] sm:$0xff]  ;;  %v1591_v59 = vld [vmem:[#allocation9 + $0x78] sm:$0xf0]  ;;  %v1581_v3 = vld [vmem:[#allocation9 + $0x60] sm:$0xf] }
  0x4e   : > { %723 = vmatpush.bf16.msra.mxu0 %v1667_v10  ;;  %v1822_v36 = vld [vmem:[%s2449_s3] ss:$0 sm:$0xff]  ;;  %v1695_v45 = vld [vmem:[#allocation7] sm:$0xff]  ;;  %v1824_v46 = vld [vmem:[#allocation6] ss:$0 sm:$0xff] }
  0x4f   : > { %736 = vmatpush.bf16.msra.mxu1 %v1675_v11  ;;  %v1823_v51 = vld [vmem:[#allocation4] ss:$0 sm:$0xff]  ;;  %v1711_v56 = vld [vmem:[#allocation9 + $0x74] sm:$0xf0]  ;;  %v1655_v2 = vld [vmem:[#allocation10 + $0x78] sm:$0xf0] }
  0x50   : > { %819 = vmatpush.bf16.msra.mxu2 %v1683_v16  ;;  %v1710_v57 = vld [vmem:[#allocation9 + $0x74] sm:$0xf]  ;;  %v1590_v58 = vor.u32 %v1711_v56, %v1589_v55  ;;  %v1727_v61 = vld [vmem:[#allocation10 + $0x74] sm:$0xf0]  ;;  %v1709_v6 = vld [vmem:[#allocation9 + $0x64] sm:$0xf0] }
  0x51   : > { %900 = vmatpush.bf16.msra.mxu3 %v1691_v17  ;;  %v1594_v63 = vor.u32 %v1710_v57, %v1591_v59  ;;  %v1654_v0 = vor.u32 %v1727_v61, %v1653_v60  ;;  %v1726_v1 = vld [vmem:[#allocation10 + $0x74] sm:$0xf]  ;;  %v1708_v7 = vld [vmem:[#allocation9 + $0x64] sm:$0xf]  ;;  %v1582_v9 = vor.u32 %v1709_v6, %v1581_v3  ;;  %v1583_v10 = vld [vmem:[#allocation9 + $0x68] sm:$0xf0] }
  0x52   : > { %724 = vmatpush.bf16.msra.mxu0 %v1666_v14  ;;  %v1658_v5 = vor.u32 %v1726_v1, %v1655_v2  ;;  %v1645_v11 = vld [vmem:[#allocation10 + $0x60] sm:$0xf]  ;;  %v1725_v12 = vld [vmem:[#allocation10 + $0x64] sm:$0xf0]  ;;  %v1724_v13 = vld [vmem:[#allocation10 + $0x64] sm:$0xf]  ;;  %v1586_v14 = vor.u32 %v1708_v7, %v1583_v10 }
  0x53   : > { %737 = vmatpush.bf16.msra.mxu1 %v1674_v15  ;;  %v1646_v15 = vor.u32 %v1725_v12, %v1645_v11  ;;  %v1647_v16 = vld [vmem:[#allocation10 + $0x68] sm:$0xf0]  ;;  %v1573_v17 = vld [vmem:[#allocation9 + $0x50] sm:$0xf]  ;;  %v1718_v56 = vld [vmem:[#allocation10 + $0x34] sm:$0xf] }
  0x54   : > { %820 = vmatpush.bf16.msra.mxu2 %v1682_v20  ;;  %v1650_v20 = vor.u32 %v1724_v13, %v1647_v16  ;;  %v1623_v57 = vld [vmem:[#allocation10 + $0x38] sm:$0xf0]  ;;  %v1549_v59 = vld [vmem:[#allocation9 + $0x20] sm:$0xf]  ;;  %v1701_v60 = vld [vmem:[#allocation9 + $0x24] sm:$0xf0] }
  0x55   : > { %901 = vmatpush.bf16.msra.mxu3 %v1690_v21  ;;  %v1551_v1 = vld [vmem:[#allocation9 + $0x28] sm:$0xf0]  ;;  %v1626_v3 = vor.u32 %v1718_v56, %v1623_v57  ;;  %v1717_v6 = vld [vmem:[#allocation10 + $0x24] sm:$0xf0]  ;;  %v1550_v11 = vor.u32 %v1701_v60, %v1549_v59  ;;  %v1103_v59 = vld [vmem:[%s2472_s5] sm:$0x3] }
  0x56   : > { %725 = vmatpush.bf16.msra.mxu0 %v1665_v18  ;;  %v1707_v18 = vld [vmem:[#allocation9 + $0x54] sm:$0xf0]  ;;  %v1615_v10 = vld [vmem:[#allocation10 + $0x28] sm:$0xf0]  ;;  %v1106_v60 = vperm.slane %v1103_v59, 1 }
  0x57   : > { %738 = vmatpush.bf16.msra.mxu1 %v1673_v19  ;;  %v1574_v21 = vor.u32 %v1707_v18, %v1573_v17 }
  0x58   : > { %821 = vmatpush.bf16.msra.mxu2 %v1681_v24  ;;  %v1637_v24 = vld [vmem:[#allocation10 + $0x50] sm:$0xf] }
  0x59   : > { %902 = vmatpush.bf16.msra.mxu3 %v1689_v25 }
  0x5a   : > { %726 = vmatpush.bf16.msra.mxu0 %v1664_v22  ;;  %v1706_v22 = vld [vmem:[#allocation9 + $0x54] sm:$0xf] }
  0x5b   : > { %739 = vmatpush.bf16.msra.mxu1 %v1672_v23  ;;  %v1575_v23 = vld [vmem:[#allocation9 + $0x58] sm:$0xf0] }
  0x5c   : > { %822 = vmatpush.bf16.msra.mxu2 %v1680_v32  ;;  %v1578_v25 = vor.u32 %v1706_v22, %v1575_v23 }
  0x5d   : > { %903 = vmatpush.bf16.msra.mxu3 %v1688_v33  ;;  %v1565_v33 = vld [vmem:[#allocation9 + $0x40] sm:$0xf] }
  0x5e   : > { %727 = vmatpush.bf16.msra.mxu0 %v1663_v26  ;;  %v1723_v26 = vld [vmem:[#allocation10 + $0x54] sm:$0xf0] }
  0x5f   : > { %740 = vmatpush.bf16.msra.mxu1 %v1671_v27  ;;  %v1722_v27 = vld [vmem:[#allocation10 + $0x54] sm:$0xf] }
  0x60   : > { %823 = vmatpush.bf16.msra.mxu2 %v1679_v34  ;;  %v1705_v34 = vld [vmem:[#allocation9 + $0x44] sm:$0xf0] }
  0x61   : > { %728 = vmatmul.bf16.vlgmr.msra.gmra.mxu0 %v586_v30  ;;  %904 = vmatpush.bf16.msra.mxu3 %v1687_v35  ;;  %v1639_v30 = vld [vmem:[#allocation10 + $0x58] sm:$0xf0]  ;;  %v1704_v35 = vld [vmem:[#allocation9 + $0x44] sm:$0xf] }
  0x62   : > { %741 = vmatmul.bf16.vlgmr.msra.gmra.mxu1 %v587_v31  ;;  %951 = vmatpush.bf16.msrb.mxu0 %v1695_v45  ;;  %v1638_v31 = vor.u32 %v1723_v26, %v1637_v24  ;;  %v1642_v32 = vor.u32 %v1722_v27, %v1639_v30  ;;  %v1541_v30 = vld [vmem:[#allocation9 + $0x10] sm:$0xf] }
  0x63   : > { %1061 = vmatpush.bf16.msrb.mxu1 %v1590_v58 }
  0x64   : > { %1074 = vmatpush.bf16.msrb.mxu2 %v1594_v63 }
  0x65   : > { %1189 = vmatpush.bf16.msrb.mxu3 %v1654_v0  ;;  %v1700_v0 = vld [vmem:[#allocation9 + $0x24] sm:$0xf] }
  0x66   : > { %1202 = vmatpush.bf16.msra.mxu0 %v1658_v5  ;;  %v1613_v5 = vld [vmem:[#allocation10 + $0x20] sm:$0xf] }
  0x67   : > { %1062 = vmatpush.bf16.msrb.mxu1 %v1582_v9  ;;  %v1716_v9 = vld [vmem:[#allocation10 + $0x24] sm:$0xf]  ;;  %v1614_v16 = vor.u32 %v1717_v6, %v1613_v5 }
  0x68   : > { %1075 = vmatpush.bf16.msrb.mxu2 %v1586_v14  ;;  %v1618_v17 = vor.u32 %v1716_v9, %v1615_v10 }
  0x69   : > { %1190 = vmatpush.bf16.msrb.mxu3 %v1646_v15  ;;  %v1554_v15 = vor.u32 %v1700_v0, %v1551_v1 }
  0x6a   : > { %1203 = vmatpush.bf16.msra.mxu0 %v1650_v20  ;;  %v585_v20 = vld [vmem:[%s577_s26] sm:$0xff] }
  0x6b   : > { %1063 = vmatpush.bf16.msrb.mxu1 %v1574_v21 }
  0x6c   : > { %1076 = vmatpush.bf16.msrb.mxu2 %v1578_v25 }
  0x6d   : > { %1191 = vmatpush.bf16.msrb.mxu3 %v1638_v31  ;;  %v1699_v31 = vld [vmem:[#allocation9 + $0x14] sm:$0xf0] }
  0x6e   : > { %1204 = vmatpush.bf16.msra.mxu0 %v1642_v32  ;;  %v1698_v32 = vld [vmem:[#allocation9 + $0x14] sm:$0xf] }
  0xde   : > { %v729_v37 = vpop.f32.mrf.mxu0 }
  0xdf   : > { %v742_v38 = vpop.f32.mrf.mxu1  ;;  %v730_v39 = vadd.f32 %v1822_v36, %v729_v37  ;;  %v1567_v36 = vld [vmem:[#allocation9 + $0x48] sm:$0xf0]  ;;  %v1629_v37 = vld [vmem:[#allocation10 + $0x40] sm:$0xf] }
  0xe1   : > { %v743_v40 = vadd.f32 %v742_v38, %v730_v39  ;;  %v1721_v38 = vld [vmem:[#allocation10 + $0x44] sm:$0xf0] }
  0xe2   : > { %v1630_v45 = vor.u32 %v1721_v38, %v1629_v37 }
  0xe3   : > { %v746_v41 = vmax.f32 %v743_v40, 0.0  ;;  %v1566_v40 = vor.u32 %v1705_v34, %v1565_v33  ;;  %v1542_v33 = vor.u32 %v1699_v31, %v1541_v30  ;;  %v1543_v34 = vld [vmem:[#allocation9 + $0x18] sm:$0xf0] }
  0xe4   : > { %1192 = vmatpush.bf16.msrb.mxu3 %v1630_v45  ;;  %v1546_v37 = vor.u32 %v1698_v32, %v1543_v34  ;;  %v1597_v45 = vld [vmem:[#allocation10] sm:$0xf] }
  0xe5   : > { %v747_v42 = vpack.c.bf16 %v746_v41, %v746_v41  ;;  %v1720_v41 = vld [vmem:[#allocation10 + $0x44] sm:$0xf]  ;;  %1064 = vmatpush.bf16.msrb.mxu1 %v1566_v40 }
  0xe6   : > { %v731_v43 = vpop.f32.mrf.mxu0 }
  0xe7   : > { %v744_v44 = vpop.f32.mrf.mxu1  ;;  %824 = vmatmul.bf16.vlgmr.msra.gmra.mxu2 %v747_v42  ;;  %905 = vmatmul.bf16.vlgmr.msra.gmra.mxu3 %v747_v42  ;;  %v1631_v42 = vld [vmem:[#allocation10 + $0x48] sm:$0xf0] }
  0xe8   : > { %v1570_v44 = vor.u32 %v1704_v35, %v1567_v36  ;;  %v1605_v35 = vld [vmem:[#allocation10 + $0x10] sm:$0xf]  ;;  %v1715_v36 = vld [vmem:[#allocation10 + $0x14] sm:$0xf0] }
  0xe9   : > { %v1606_v38 = vor.u32 %v1715_v36, %v1605_v35 }
  0xea   : > { %1077 = vmatpush.bf16.msrb.mxu2 %v1570_v44  ;;  %v1535_v44 = vld [vmem:[#allocation9 + $0x8] sm:$0xf0] }
 0x16a   : > { %v825_v47 = vpop.f32.mrf.mxu2  ;;  %v906_v48 = vpop.f32.mrf.mxu3 }
 0x16b   : > { %v907_v49 = vadd.f32 %v1824_v46, %v906_v48  ;;  %v2384_v54 = vadd.f32 %v1823_v51, %v825_v47  ;;  %v1557_v46 = vld [vmem:[#allocation9 + $0x30] sm:$0xf]  ;;  %v1703_v47 = vld [vmem:[#allocation9 + $0x34] sm:$0xf0]  ;;  %v1702_v48 = vld [vmem:[#allocation9 + $0x34] sm:$0xf] }
 0x16c   : > { %v1621_v51 = vld [vmem:[#allocation10 + $0x30] sm:$0xf]  ;;  %v1558_v58 = vor.u32 %v1703_v47, %v1557_v46  ;;  %v1713_v46 = vld [vmem:[#allocation10 + $0x4] sm:$0xf0] }
 0x16d   : > { %v910_v50 = vmul.f32 1.442695, %v907_v49  ;;  %v1215_v8 = vmul.f32 %v2384_v54, %v2384_v54  ;;  %v1634_v49 = vor.u32 %v1720_v41, %v1631_v42  ;;  %v1533_v41 = vld [vmem:[#allocation9] sm:$0xf]  ;;  %v1696_v42 = vld [vmem:[#allocation9 + $0x4] sm:$0xf] }
 0x16e   : > { %1065 = vmatpush.bf16.msrb.mxu1 %v1558_v58  ;;  %v1538_v47 = vor.u32 %v1696_v42, %v1535_v44 }
 0x16f   : > { %1826 = vpow2.f32 %v910_v50  ;;  %v1559_v50 = vld [vmem:[#allocation9 + $0x38] sm:$0xf0]  ;;  %1205 = vmatpush.bf16.msra.mxu0 %v1634_v49  ;;  %v1712_v49 = vld [vmem:[#allocation10 + $0x4] sm:$0xf] }
 0x172   : > { %v827_v52 = vpop.f32.mrf.mxu2  ;;  %v908_v53 = vpop.f32.mrf.mxu3  ;;  %1066 = vmatpush.bf16.msrb.mxu1 %v1550_v11 }
 0x173   : > { %v1719_v52 = vld [vmem:[#allocation10 + $0x34] sm:$0xf0]  ;;  %1206 = vmatpush.bf16.msra.mxu0 %v1626_v3  ;;  %v1105_v3 = vperm.slane %v1103_v59, 0 }
 0x174   : > { %v1622_v63 = vor.u32 %v1719_v52, %v1621_v51  ;;  %v1825_v52 = vld [vmem:[%s2455_s9] ss:$0 sm:$0xff] }
 0x175   : > { %v1827_v62 = vpop.eup %1826 }
 0x176   : > { %v2386_v4 = vadd.f32 0.0001, %v1827_v62  ;;  %v1562_v62 = vor.u32 %v1702_v48, %v1559_v50  ;;  %1193 = vmatpush.bf16.msrb.mxu3 %v1622_v63  ;;  %1067 = vmatpush.bf16.msrb.mxu1 %v1542_v33  ;;  %v1598_v48 = vor.u32 %v1713_v46, %v1597_v45  ;;  %v1599_v50 = vld [vmem:[#allocation10 + $0x8] sm:$0xf0]  ;;  %v975_v63 = vld [vmem:[%s2473_s14] sm:$0x3] }
 0x177   : > { %1207 = vmatpush.bf16.msra.mxu0 %v1618_v17  ;;  %v1602_v51 = vor.u32 %v1712_v49, %v1599_v50  ;;  %v978_v1 = vperm.slane %v975_v63, 1 }
 0x178   : > { %1828 = vrsqrt.f32 %v2386_v4  ;;  %v1216_v19 = vadd.f32 %v1215_v8, %v2386_v4  ;;  %1078 = vmatpush.bf16.msrb.mxu2 %v1562_v62  ;;  %vm920_vm1 = vcmp.eq.f32.partialorder %v2386_v4, inf  ;;  %v923_v21 = vand.u32 2147483648, %v2386_v4 }
 0x179   : > { %1830 = vlog2.f32 %v2386_v4  ;;  %vm922_vm2 = vcmp.eq.f32.partialorder %v2386_v4, 0.0 }
 0x17a   : > { %v1659_v2 = vadd.f32 -1.0, %v1216_v19  ;;  %1194 = vmatpush.bf16.msrb.mxu3 %v1614_v16 }
 0x17c   : > { %v1218_v12 = vmul.f32 0.5, %v1659_v2  ;;  %1079 = vmatpush.bf16.msrb.mxu2 %v1554_v15 }
 0x17e   : > { %v1829_v39 = vpop.eup %1828  ;;  %1195 = vmatpush.bf16.msrb.mxu3 %v1606_v38 }
 0x17f   : > { %v914_v43 = vmul.f32 %v1829_v39, %v2386_v4  ;;  %v1831_v53 = vpop.eup %1830 }
 0x180   : > { %v1220_v7 = vmul.f32 0.6931472, %v1831_v53  ;;  %1080 = vmatpush.bf16.msrb.mxu2 %v1546_v37 }
 0x181   : > { %v915_v55 = vmul.f32 %v1829_v39, %v914_v43 }
 0x182   : > { %v1221_v13 = vmul.f32 0.5, %v1220_v7  ;;  %1196 = vmatpush.bf16.msrb.mxu3 %v1598_v48  ;;  %v977_v7 = vperm.slane %v975_v63, 0 }
 0x183   : > { %v916_v61 = vmul.f32 0.5, %v915_v55 }
 0x184   : > { %v1222_v18 = vsub.f32 %v1218_v12, %v1221_v13  ;;  %1081 = vmatpush.bf16.msrb.mxu2 %v1538_v47 }
 0x185   : > { %v917_v8 = vsub.f32 1.5, %v916_v61 }
 0x186   : > { %v2410_v22 = vsel %vm940_vm0, %v1222_v18, 0.0 }
 0x187   : > { %v918_v14 = vmul.f32 %v1829_v39, %v917_v8  ;;  %v1607_v39 = vld [vmem:[#allocation10 + $0x18] sm:$0xf0] }
 0x189   : > { %v919_v19 = vmul.f32 %v918_v14, %v2386_v4 }
 0x18b   : > { %v921_v23 = vsel %vm920_vm1, %v2386_v4, %v919_v19  ;;  %v1714_v4 = vld [vmem:[#allocation10 + $0x14] sm:$0xf] }
 0x18c   : > { %v924_v24 = vsel %vm922_vm2, %v923_v21, %v921_v23  ;;  %v1610_v40 = vor.u32 %v1714_v4, %v1607_v39 }
 0x18d   : > { %v925_v25 = vmul.f32 %v924_v24, %v585_v20 }
 0x18e   : > { %1208 = vmatpush.bf16.msra.mxu0 %v1610_v40 }
 0x18f   : > { %v926_v26 = vadd.f32 %v925_v25, %v2384_v54  ;;  %v1697_v54 = vld [vmem:[#allocation9 + $0x4] sm:$0xf0] }
 0x190   : > { %v1534_v43 = vor.u32 %v1697_v54, %v1533_v41 }
 0x191   : > { %v927_v27 = vpack.c.bf16 %v926_v26, %v926_v26 }
 0x192   : > { %1068 = vmatpush.bf16.msrb.mxu1 %v1534_v43  ;;  %1209 = vmatpush.bf16.msra.mxu0 %v1602_v51 }
 0x193   : > { %1530 = vmatmul.msk.bf16.vlgmr.msrb.gmra.mxu0 %vm940_vm0, %v927_v27 }
 0x210   : > { %v953_v53 = vpop.f32.mrf.mxu0 }
 0x211   : > { %v954_v55 = vadd.f32 %v1825_v52, %v953_v53 }
 0x213   : > { %v957_v56 = vmax.f32 %v954_v55, 0.0 }
 0x215   : > { %v958_v57 = vpack.c.bf16 %v957_v56, %v957_v56 }
 0x217   : > { %1069 = vmatmul.bf16.vlgmr.msrb.gmra.mxu1 %v958_v57  ;;  %1082 = vmatmul.bf16.vlgmr.msrb.gmra.mxu2 %v958_v57 }
 0x218   : > { %1197 = vmatmul.bf16.vlgmr.msrb.gmra.mxu3 %v958_v57  ;;  %1210 = vmatmul.bf16.vlgmr.msra.gmra.mxu0 %v958_v57  ;;  %v955_v58 = vpop.f32.mrf.mxu0 }
 0x294   : > { %v1070_v61 = vpop.f32.mrf.mxu1 }
 0x295   : > { %v1211_v62 = vpop.f32.mrf.mxu0  ;;  %v1071_v14 = vadd.f32 %v1070_v61, %v977_v7 }
 0x296   : > { %v1212_v0 = vadd.f32 %v1211_v62, %v1106_v60 }
 0x297   : > { %v1226_v18 = vsub.f32 %v2359_v28, %v1071_v14 }
 0x298   : > { %v1231_v2 = vsub.f32 0.0, %v1212_v0 }
 0x299   : > { %v1228_v23 = vmul.f32 %v1226_v18, %v1226_v18 }
 0x29a   : > { %v1234_v5 = vmul.f32 1.442695, %v1231_v2  ;;  %v1083_v6 = vpop.f32.mrf.mxu2 }
 0x29b   : > { %v1084_v8 = vadd.f32 %v1083_v6, %v978_v1  ;;  %v1198_v9 = vpop.f32.mrf.mxu3 }
 0x29c   : > { %v1199_v10 = vadd.f32 %v1198_v9, %v1105_v3  ;;  %v1072_v11 = vpop.f32.mrf.mxu1  ;;  %1832 = vpow2.f32 %v1234_v5 }
 0x29d   : > { %v1213_v12 = vpop.f32.mrf.mxu0  ;;  %v1227_v15 = vsub.f32 %v2363_v29, %v1084_v8  ;;  %v1245_v29 = vlaneseq }
 0x29e   : > { %v1230_v13 = vsub.f32 0.0, %v1199_v10 }
 0x29f   : > { %v1229_v19 = vmul.f32 %v1227_v15, %v1227_v15  ;;  %v1246_v33 = vand.u32 127, %v1245_v29 }
 0x2a0   : > { %v1232_v16 = vmul.f32 1.442695, %v1230_v13 }
 0x2a1   : > { %vm1248_vm3 = vcmp.eq.s32.totalorder %v1246_v33, 1  ;;  %vm1247_vm4 = vcmp.eq.s32.totalorder %v1246_v33, 0 }
 0x2a2   : > { %1834 = vpow2.f32 %v1232_v16  ;;  %v1085_v17 = vpop.f32.mrf.mxu2  ;;  %v1833_v21 = vpop.eup %1832 }
 0x2a3   : > { %v1200_v20 = vpop.f32.mrf.mxu3  ;;  %v1237_v24 = vmul.f32 %v1833_v21, %v1229_v19 }
 0x2a5   : > { %v1239_v30 = vadd.f32 %v1237_v24, %v1212_v0 }
 0x2a8   : > { %v1835_v25 = vpop.eup %1834 }
 0x2a9   : > { %v1236_v26 = vmul.f32 %v1835_v25, %v1228_v23 }
 0x2ab   : > { %v1238_v27 = vadd.f32 %v1236_v26, %v1199_v10 }
 0x2ad   : > { %v1240_v31 = vadd.f32 %v1239_v30, %v1238_v27 }
 0x2af   : > { %1241 = vadd.xlane.f32.xlu0 %v1240_v31 }
 0x2b7   : > { %1224 = vadd.xlane.f32.xlu0 %v2410_v22 }
 0x322   : > { %v1242_v32 = vpop.xlane.xlu0 %1241 }
 0x323   : > { %v1243_v34 = vmul.f32 0.5, %v1242_v32 }
 0x325   : > { %v1244_v28 = vadd.f32 235.24826, %v1243_v34 }
 0x32a   : > { %v1225_v35 = vpop.xlane.xlu0 %1224 }
 0x32b   : > { %v1249_v36 = vsel %vm1248_vm3, %v1225_v35, 0.0 }
 0x32c   : > { %v1250_v37 = vsel %vm1247_vm4, %v1244_v28, %v1249_v36 }
 0x32d   : > { %1252 = vst.msk [vmem:[%s581_s24] sm:$0xff] %vm1251_vm5, %v1250_v37 }
 0x32e PF: > { %p27_p3 = scmp.ge.s32.totalorder %s2212_s18, 4   ;;  %s2475_s29 = smov %s2054_s30 }
 0x32f   : > { %s2476_s30 = smov %s2058_s15  ;;  %s2477_s15 = smov %s2223_s25 }
 0x330   : > { %s2478_s16 = smov %s2212_s18  ;;  %29 = sbr.rel (!%p27_p3) target bundleno = 12 (0xc), region = 139 }
 0x335   :  { %1272 = vsyncpa [#allocation3], 1 }
 0x336   :  { %1274 = vsyncpa [#allocation3 + $0x1], 1 }
 0x337   :  { %1275 = vsyncpa [#allocation5], 1 }
 0x338   :  { %1276 = vsyncpa [#allocation8], 1 }
 0x339   :  { %1277 = vsyncpa [#allocation11], 1 }

</bundles_post_ra>
